<compile_context>
chip_gen: v7x
topology: tpu7x:2x2x1
jax: 0.10.0
libtpu: 0.0.40
codegen_flags: <defaults>
</compile_context>

<pallas_src>
import functools

import jax
import jax.numpy as jnp
from jax.experimental import pallas as pl
from jax.experimental.pallas import tpu as pltpu


# ----------------------------------------------------------------------------
# Primary kernel: in-kernel DMA gather + fused position-embedding add
# ----------------------------------------------------------------------------
def _gather_add_kernel(tok_ref, emb_hbm, pos_ref, o_ref, buf, sems, *, bb, T):
    """One grid step = `bb` sequences of `T` tokens.

    tok_ref : SMEM (B*T,) int32          scalar-prefetched token ids
    emb_hbm : ANY  (V, D)                embedding table, stays in HBM
    pos_ref : VMEM (T, D)                position embedding
    o_ref   : VMEM (bb, T, D)            output block
    buf     : VMEM (bb, T, D) scratch    gathered embedding rows
    sems    : DMA semaphores (bb, T)
    """
    g = pl.program_id(0)
    base = g * (bb * T)

    # Issue every row-gather DMA for this block first; they all fly concurrently.
    copies = []
    for bi in range(bb):                         # static, small
        for t in range(T):                       # static
            tok = tok_ref[base + bi * T + t]     # SMEM scalar read (data-dependent row)
            cp = pltpu.make_async_copy(
                emb_hbm.at[pl.ds(tok, 1), :],    # (1, D) row in HBM
                buf.at[bi, pl.ds(t, 1), :],      # (1, D) slot in VMEM scratch
                sems.at[bi, t],
            )
            cp.start()
            copies.append(cp)
    for cp in copies:
        cp.wait()

    # Fused position-embedding add (broadcast over the bb sequences in this block).
    o_ref[...] = buf[...] + pos_ref[...][None]


def clip_embedding(tokens, tok_emb, pos_emb, *, block_b=None):
    """x = tok_emb[tokens] + pos_emb  — PyTorch CLIPEmbedding.forward."""
    tokens = tokens.astype(jnp.int32)            # tokens.type(torch.long)
    B, T = tokens.shape
    V, D = tok_emb.shape
    assert pos_emb.shape == (T, D)

    bb = block_b if block_b is not None else (2 if B % 2 == 0 else 1)
    assert B % bb == 0

    kern = functools.partial(_gather_add_kernel, bb=bb, T=T)

    return pl.pallas_call(
        kern,
        out_shape=jax.ShapeDtypeStruct((B, T, D), tok_emb.dtype),
        grid_spec=pltpu.PrefetchScalarGridSpec(
            num_scalar_prefetch=1,                               # token ids -> SMEM
            grid=(B // bb,),
            in_specs=[
                pl.BlockSpec(memory_space=pl.ANY),               # embedding table (HBM)
                pl.BlockSpec((T, D), lambda g, tok: (0, 0)),     # position embedding
            ],
            out_specs=pl.BlockSpec((bb, T, D), lambda g, tok: (g, 0, 0)),
            scratch_shapes=[
                pltpu.VMEM((bb, T, D), tok_emb.dtype),           # gathered rows
                pltpu.SemaphoreType.DMA((bb, T)),                # one sem per row DMA
            ],
        ),
        compiler_params=pltpu.CompilerParams(
            dimension_semantics=("parallel",),                   # no cross-step carry
        ),
    )(tokens.reshape(-1), tok_emb, pos_emb)


# ----------------------------------------------------------------------------
# Fallback kernel (gather in wrapper, position add in Pallas) — kept only as a
# safety net in case the manual-DMA gather fails to lower on some TPU generation.
# ----------------------------------------------------------------------------
def _posadd_kernel(x_ref, pos_ref, o_ref):
    o_ref[...] = x_ref[...] + pos_ref[...][None]


def clip_embedding_fallback(tokens, tok_emb, pos_emb, *, block_b=None):
    # TODO(synk): in this fallback the data-dependent nn.Embedding gather is done in
    # plain JAX; the primary path above performs it in-kernel via per-row DMAs.
    x = jnp.take(tok_emb, tokens.astype(jnp.int32), axis=0)     # (B, T, D)
    B, T = tokens.shape
    D = tok_emb.shape[1]
    bb = block_b if block_b is not None else (2 if B % 2 == 0 else 1)
    assert B % bb == 0
    return pl.pallas_call(
        _posadd_kernel,
        out_shape=jax.ShapeDtypeStruct((B, T, D), tok_emb.dtype),
        grid_spec=pltpu.PrefetchScalarGridSpec(
            num_scalar_prefetch=0,
            grid=(B // bb,),
            in_specs=[pl.BlockSpec((bb, T, D), lambda g: (g, 0, 0)),
                      pl.BlockSpec((T, D), lambda g: (0, 0))],
            out_specs=pl.BlockSpec((bb, T, D), lambda g: (g, 0, 0)),
        ),
        compiler_params=pltpu.CompilerParams(dimension_semantics=("parallel",)),
    )(x, pos_emb)


# ----------------------------------------------------------------------------
if __name__ == "__main__":
    # Scaled-down config (real CLIP: n_vocab=49408, n_embd=768, n_token=77).
    N_VOCAB, N_EMBD, N_TOKEN = 100, 64, 16
    B = 4

    key = jax.random.PRNGKey(0)
    k_emb, k_pos, k_tok = jax.random.split(key, 3)
    tok_emb = 0.02 * jax.random.normal(k_emb, (N_VOCAB, N_EMBD), jnp.float32)
    # PyTorch inits position_embedding to zeros; small random keeps the add non-trivial.
    pos_emb = 0.02 * jax.random.normal(k_pos, (N_TOKEN, N_EMBD), jnp.float32)
    tokens = jax.random.randint(k_tok, (B, N_TOKEN), 0, N_VOCAB, dtype=jnp.int32)

    # Pure-JAX reference (mirrors the PyTorch forward exactly; kernel is bit-compatible).
    ref = jnp.take(tok_emb, tokens, axis=0) + pos_emb[None]

    def check(out):
        assert out.shape == (B, N_TOKEN, N_EMBD) and out.dtype == jnp.float32
        err = float(jnp.max(jnp.abs(out - ref)))
        assert err <= 1e-6, f"mismatch vs reference: {err}"

    try:
        out = jax.block_until_ready(
            clip_embedding(tokens, tok_emb, pos_emb, block_b=2))
        check(out)
    except Exception:
        out = jax.block_until_ready(
            clip_embedding_fallback(tokens, tok_emb, pos_emb, block_b=2))
        check(out)

    print("KERNEL_OK")
</pallas_src>

<mosaic_0001>
module attributes {stable_mosaic.version = 11 : i64} {
  func.func @_gather_add_kernel(%arg0: i32, %arg1: memref<64xi32, #tpu.memory_space<smem>>, %arg2: memref<100x64xf32, #tpu.memory_space<any>>, %arg3: memref<16x64xf32, #tpu.memory_space<vmem>>, %arg4: memref<2x16x64xf32, #tpu.memory_space<vmem>>, %arg5: memref<2x16x64xf32, #tpu.memory_space<vmem>>, %arg6: memref<2x16x!tpu.dma_semaphore, #tpu.memory_space<semaphore_mem>>) attributes {dimension_semantics = [#tpu.dimension_semantics<parallel>], iteration_bounds = array<i64: 2>, scalar_prefetch = 1 : i64, scratch_operands = 2 : i64, tpu.core_type = #tpu.core_type<tc>, window_params = [{}, {pipeline_mode = #tpu.pipeline_mode<synchronous>, transform_indices = @transform_1, window_bounds = array<i64: 16, 64>}, {transform_indices = @transform_2, window_bounds = array<i64: 2, 16, 64>}]} {
    %c32_i32 = arith.constant 32 : i32
    %0 = arith.muli %arg0, %c32_i32 : i32
    %c0_i32 = arith.constant 0 : i32
    %1 = arith.addi %0, %c0_i32 : i32
    %c0_i32_0 = arith.constant 0 : i32
    %2 = arith.addi %1, %c0_i32_0 : i32
    %3 = arith.index_cast %2 : i32 to index
    %4 = memref.load %arg1[%3] : memref<64xi32, #tpu.memory_space<smem>>
    %c0_i32_1 = arith.constant 0 : i32
    %c0_i32_2 = arith.constant 0 : i32
    %c0_i32_3 = arith.constant 0 : i32
    %c0_i32_4 = arith.constant 0 : i32
    %5 = tpu.memref_slice %arg2[%4, %c0_i32_4] : memref<100x64xf32, #tpu.memory_space<any>> -> memref<1x64xf32, #tpu.memory_space<any>>
    %c0_i32_5 = arith.constant 0 : i32
    %c0_i32_6 = arith.constant 0 : i32
    %6 = tpu.memref_slice %arg5[%c0_i32_1, %c0_i32_5, %c0_i32_6] : memref<2x16x64xf32, #tpu.memory_space<vmem>> -> memref<1x1x64xf32, #tpu.memory_space<vmem>>
    %7 = tpu.memref_squeeze %6 : memref<1x1x64xf32, #tpu.memory_space<vmem>> -> memref<1x64xf32, #tpu.memory_space<vmem>>
    %8 = tpu.memref_slice %arg6[%c0_i32_2, %c0_i32_3] : memref<2x16x!tpu.dma_semaphore, #tpu.memory_space<semaphore_mem>> -> memref<1x1x!tpu.dma_semaphore, #tpu.memory_space<semaphore_mem>>
    %9 = tpu.memref_squeeze %8 : memref<1x1x!tpu.dma_semaphore, #tpu.memory_space<semaphore_mem>> -> memref<!tpu.dma_semaphore, #tpu.memory_space<semaphore_mem>>
    tpu.enqueue_dma source(%5 : memref<1x64xf32, #tpu.memory_space<any>>) target(%7 : memref<1x64xf32, #tpu.memory_space<vmem>>) target_semaphore(%9 : memref<!tpu.dma_semaphore, #tpu.memory_space<semaphore_mem>>)
    %c0_i32_7 = arith.constant 0 : i32
    %10 = arith.addi %0, %c0_i32_7 : i32
    %c1_i32 = arith.constant 1 : i32
    %11 = arith.addi %10, %c1_i32 : i32
    %12 = arith.index_cast %11 : i32 to index
    %13 = memref.load %arg1[%12] : memref<64xi32, #tpu.memory_space<smem>>
    %c0_i32_8 = arith.constant 0 : i32
    %c0_i32_9 = arith.constant 0 : i32
    %c1_i32_10 = arith.constant 1 : i32
    %c0_i32_11 = arith.constant 0 : i32
    %14 = tpu.memref_slice %arg2[%13, %c0_i32_11] : memref<100x64xf32, #tpu.memory_space<any>> -> memref<1x64xf32, #tpu.memory_space<any>>
    %c1_i32_12 = arith.constant 1 : i32
    %c0_i32_13 = arith.constant 0 : i32
    %15 = tpu.memref_slice %arg5[%c0_i32_8, %c1_i32_12, %c0_i32_13] : memref<2x16x64xf32, #tpu.memory_space<vmem>> -> memref<1x1x64xf32, #tpu.memory_space<vmem>>
    %16 = tpu.memref_squeeze %15 : memref<1x1x64xf32, #tpu.memory_space<vmem>> -> memref<1x64xf32, #tpu.memory_space<vmem>>
    %17 = tpu.memref_slice %arg6[%c0_i32_9, %c1_i32_10] : memref<2x16x!tpu.dma_semaphore, #tpu.memory_space<semaphore_mem>> -> memref<1x1x!tpu.dma_semaphore, #tpu.memory_space<semaphore_mem>>
    %18 = tpu.memref_squeeze %17 : memref<1x1x!tpu.dma_semaphore, #tpu.memory_space<semaphore_mem>> -> memref<!tpu.dma_semaphore, #tpu.memory_space<semaphore_mem>>
    tpu.enqueue_dma source(%14 : memref<1x64xf32, #tpu.memory_space<any>>) target(%16 : memref<1x64xf32, #tpu.memory_space<vmem>>) target_semaphore(%18 : memref<!tpu.dma_semaphore, #tpu.memory_space<semaphore_mem>>)
    %c0_i32_14 = arith.constant 0 : i32
    %19 = arith.addi %0, %c0_i32_14 : i32
    %c2_i32 = arith.constant 2 : i32
    %20 = arith.addi %19, %c2_i32 : i32
    %21 = arith.index_cast %20 : i32 to index
    %22 = memref.load %arg1[%21] : memref<64xi32, #tpu.memory_space<smem>>
    %c0_i32_15 = arith.constant 0 : i32
    %c0_i32_16 = arith.constant 0 : i32
    %c2_i32_17 = arith.constant 2 : i32
    %c0_i32_18 = arith.constant 0 : i32
    %23 = tpu.memref_slice %arg2[%22, %c0_i32_18] : memref<100x64xf32, #tpu.memory_space<any>> -> memref<1x64xf32, #tpu.memory_space<any>>
    %c2_i32_19 = arith.constant 2 : i32
    %c0_i32_20 = arith.constant 0 : i32
    %24 = tpu.memref_slice %arg5[%c0_i32_15, %c2_i32_19, %c0_i32_20] : memref<2x16x64xf32, #tpu.memory_space<vmem>> -> memref<1x1x64xf32, #tpu.memory_space<vmem>>
    %25 = tpu.memref_squeeze %24 : memref<1x1x64xf32, #tpu.memory_space<vmem>> -> memref<1x64xf32, #tpu.memory_space<vmem>>
    %26 = tpu.memref_slice %arg6[%c0_i32_16, %c2_i32_17] : memref<2x16x!tpu.dma_semaphore, #tpu.memory_space<semaphore_mem>> -> memref<1x1x!tpu.dma_semaphore, #tpu.memory_space<semaphore_mem>>
    %27 = tpu.memref_squeeze %26 : memref<1x1x!tpu.dma_semaphore, #tpu.memory_space<semaphore_mem>> -> memref<!tpu.dma_semaphore, #tpu.memory_space<semaphore_mem>>
    tpu.enqueue_dma source(%23 : memref<1x64xf32, #tpu.memory_space<any>>) target(%25 : memref<1x64xf32, #tpu.memory_space<vmem>>) target_semaphore(%27 : memref<!tpu.dma_semaphore, #tpu.memory_space<semaphore_mem>>)
    %c0_i32_21 = arith.constant 0 : i32
    %28 = arith.addi %0, %c0_i32_21 : i32
    %c3_i32 = arith.constant 3 : i32
    %29 = arith.addi %28, %c3_i32 : i32
    %30 = arith.index_cast %29 : i32 to index
    %31 = memref.load %arg1[%30] : memref<64xi32, #tpu.memory_space<smem>>
    %c0_i32_22 = arith.constant 0 : i32
    %c0_i32_23 = arith.constant 0 : i32
    %c3_i32_24 = arith.constant 3 : i32
    %c0_i32_25 = arith.constant 0 : i32
    %32 = tpu.memref_slice %arg2[%31, %c0_i32_25] : memref<100x64xf32, #tpu.memory_space<any>> -> memref<1x64xf32, #tpu.memory_space<any>>
    %c3_i32_26 = arith.constant 3 : i32
    %c0_i32_27 = arith.constant 0 : i32
    %33 = tpu.memref_slice %arg5[%c0_i32_22, %c3_i32_26, %c0_i32_27] : memref<2x16x64xf32, #tpu.memory_space<vmem>> -> memref<1x1x64xf32, #tpu.memory_space<vmem>>
    %34 = tpu.memref_squeeze %33 : memref<1x1x64xf32, #tpu.memory_space<vmem>> -> memref<1x64xf32, #tpu.memory_space<vmem>>
    %35 = tpu.memref_slice %arg6[%c0_i32_23, %c3_i32_24] : memref<2x16x!tpu.dma_semaphore, #tpu.memory_space<semaphore_mem>> -> memref<1x1x!tpu.dma_semaphore, #tpu.memory_space<semaphore_mem>>
    %36 = tpu.memref_squeeze %35 : memref<1x1x!tpu.dma_semaphore, #tpu.memory_space<semaphore_mem>> -> memref<!tpu.dma_semaphore, #tpu.memory_space<semaphore_mem>>
    tpu.enqueue_dma source(%32 : memref<1x64xf32, #tpu.memory_space<any>>) target(%34 : memref<1x64xf32, #tpu.memory_space<vmem>>) target_semaphore(%36 : memref<!tpu.dma_semaphore, #tpu.memory_space<semaphore_mem>>)
    %c0_i32_28 = arith.constant 0 : i32
    %37 = arith.addi %0, %c0_i32_28 : i32
    %c4_i32 = arith.constant 4 : i32
    %38 = arith.addi %37, %c4_i32 : i32
    %39 = arith.index_cast %38 : i32 to index
    %40 = memref.load %arg1[%39] : memref<64xi32, #tpu.memory_space<smem>>
    %c0_i32_29 = arith.constant 0 : i32
    %c0_i32_30 = arith.constant 0 : i32
    %c4_i32_31 = arith.constant 4 : i32
    %c0_i32_32 = arith.constant 0 : i32
    %41 = tpu.memref_slice %arg2[%40, %c0_i32_32] : memref<100x64xf32, #tpu.memory_space<any>> -> memref<1x64xf32, #tpu.memory_space<any>>
    %c4_i32_33 = arith.constant 4 : i32
    %c0_i32_34 = arith.constant 0 : i32
    %42 = tpu.memref_slice %arg5[%c0_i32_29, %c4_i32_33, %c0_i32_34] : memref<2x16x64xf32, #tpu.memory_space<vmem>> -> memref<1x1x64xf32, #tpu.memory_space<vmem>>
    %43 = tpu.memref_squeeze %42 : memref<1x1x64xf32, #tpu.memory_space<vmem>> -> memref<1x64xf32, #tpu.memory_space<vmem>>
    %44 = tpu.memref_slice %arg6[%c0_i32_30, %c4_i32_31] : memref<2x16x!tpu.dma_semaphore, #tpu.memory_space<semaphore_mem>> -> memref<1x1x!tpu.dma_semaphore, #tpu.memory_space<semaphore_mem>>
    %45 = tpu.memref_squeeze %44 : memref<1x1x!tpu.dma_semaphore, #tpu.memory_space<semaphore_mem>> -> memref<!tpu.dma_semaphore, #tpu.memory_space<semaphore_mem>>
    tpu.enqueue_dma source(%41 : memref<1x64xf32, #tpu.memory_space<any>>) target(%43 : memref<1x64xf32, #tpu.memory_space<vmem>>) target_semaphore(%45 : memref<!tpu.dma_semaphore, #tpu.memory_space<semaphore_mem>>)
    %c0_i32_35 = arith.constant 0 : i32
    %46 = arith.addi %0, %c0_i32_35 : i32
    %c5_i32 = arith.constant 5 : i32
    %47 = arith.addi %46, %c5_i32 : i32
    %48 = arith.index_cast %47 : i32 to index
    %49 = memref.load %arg1[%48] : memref<64xi32, #tpu.memory_space<smem>>
    %c0_i32_36 = arith.constant 0 : i32
    %c0_i32_37 = arith.constant 0 : i32
    %c5_i32_38 = arith.constant 5 : i32
    %c0_i32_39 = arith.constant 0 : i32
    %50 = tpu.memref_slice %arg2[%49, %c0_i32_39] : memref<100x64xf32, #tpu.memory_space<any>> -> memref<1x64xf32, #tpu.memory_space<any>>
    %c5_i32_40 = arith.constant 5 : i32
    %c0_i32_41 = arith.constant 0 : i32
    %51 = tpu.memref_slice %arg5[%c0_i32_36, %c5_i32_40, %c0_i32_41] : memref<2x16x64xf32, #tpu.memory_space<vmem>> -> memref<1x1x64xf32, #tpu.memory_space<vmem>>
    %52 = tpu.memref_squeeze %51 : memref<1x1x64xf32, #tpu.memory_space<vmem>> -> memref<1x64xf32, #tpu.memory_space<vmem>>
    %53 = tpu.memref_slice %arg6[%c0_i32_37, %c5_i32_38] : memref<2x16x!tpu.dma_semaphore, #tpu.memory_space<semaphore_mem>> -> memref<1x1x!tpu.dma_semaphore, #tpu.memory_space<semaphore_mem>>
    %54 = tpu.memref_squeeze %53 : memref<1x1x!tpu.dma_semaphore, #tpu.memory_space<semaphore_mem>> -> memref<!tpu.dma_semaphore, #tpu.memory_space<semaphore_mem>>
    tpu.enqueue_dma source(%50 : memref<1x64xf32, #tpu.memory_space<any>>) target(%52 : memref<1x64xf32, #tpu.memory_space<vmem>>) target_semaphore(%54 : memref<!tpu.dma_semaphore, #tpu.memory_space<semaphore_mem>>)
    %c0_i32_42 = arith.constant 0 : i32
    %55 = arith.addi %0, %c0_i32_42 : i32
    %c6_i32 = arith.constant 6 : i32
    %56 = arith.addi %55, %c6_i32 : i32
    %57 = arith.index_cast %56 : i32 to index
    %58 = memref.load %arg1[%57] : memref<64xi32, #tpu.memory_space<smem>>
    %c0_i32_43 = arith.constant 0 : i32
    %c0_i32_44 = arith.constant 0 : i32
    %c6_i32_45 = arith.constant 6 : i32
    %c0_i32_46 = arith.constant 0 : i32
    %59 = tpu.memref_slice %arg2[%58, %c0_i32_46] : memref<100x64xf32, #tpu.memory_space<any>> -> memref<1x64xf32, #tpu.memory_space<any>>
    %c6_i32_47 = arith.constant 6 : i32
    %c0_i32_48 = arith.constant 0 : i32
    %60 = tpu.memref_slice %arg5[%c0_i32_43, %c6_i32_47, %c0_i32_48] : memref<2x16x64xf32, #tpu.memory_space<vmem>> -> memref<1x1x64xf32, #tpu.memory_space<vmem>>
    %61 = tpu.memref_squeeze %60 : memref<1x1x64xf32, #tpu.memory_space<vmem>> -> memref<1x64xf32, #tpu.memory_space<vmem>>
    %62 = tpu.memref_slice %arg6[%c0_i32_44, %c6_i32_45] : memref<2x16x!tpu.dma_semaphore, #tpu.memory_space<semaphore_mem>> -> memref<1x1x!tpu.dma_semaphore, #tpu.memory_space<semaphore_mem>>
    %63 = tpu.memref_squeeze %62 : memref<1x1x!tpu.dma_semaphore, #tpu.memory_space<semaphore_mem>> -> memref<!tpu.dma_semaphore, #tpu.memory_space<semaphore_mem>>
    tpu.enqueue_dma source(%59 : memref<1x64xf32, #tpu.memory_space<any>>) target(%61 : memref<1x64xf32, #tpu.memory_space<vmem>>) target_semaphore(%63 : memref<!tpu.dma_semaphore, #tpu.memory_space<semaphore_mem>>)
    %c0_i32_49 = arith.constant 0 : i32
    %64 = arith.addi %0, %c0_i32_49 : i32
    %c7_i32 = arith.constant 7 : i32
    %65 = arith.addi %64, %c7_i32 : i32
    %66 = arith.index_cast %65 : i32 to index
    %67 = memref.load %arg1[%66] : memref<64xi32, #tpu.memory_space<smem>>
    %c0_i32_50 = arith.constant 0 : i32
    %c0_i32_51 = arith.constant 0 : i32
    %c7_i32_52 = arith.constant 7 : i32
    %c0_i32_53 = arith.constant 0 : i32
    %68 = tpu.memref_slice %arg2[%67, %c0_i32_53] : memref<100x64xf32, #tpu.memory_space<any>> -> memref<1x64xf32, #tpu.memory_space<any>>
    %c7_i32_54 = arith.constant 7 : i32
    %c0_i32_55 = arith.constant 0 : i32
    %69 = tpu.memref_slice %arg5[%c0_i32_50, %c7_i32_54, %c0_i32_55] : memref<2x16x64xf32, #tpu.memory_space<vmem>> -> memref<1x1x64xf32, #tpu.memory_space<vmem>>
    %70 = tpu.memref_squeeze %69 : memref<1x1x64xf32, #tpu.memory_space<vmem>> -> memref<1x64xf32, #tpu.memory_space<vmem>>
    %71 = tpu.memref_slice %arg6[%c0_i32_51, %c7_i32_52] : memref<2x16x!tpu.dma_semaphore, #tpu.memory_space<semaphore_mem>> -> memref<1x1x!tpu.dma_semaphore, #tpu.memory_space<semaphore_mem>>
    %72 = tpu.memref_squeeze %71 : memref<1x1x!tpu.dma_semaphore, #tpu.memory_space<semaphore_mem>> -> memref<!tpu.dma_semaphore, #tpu.memory_space<semaphore_mem>>
    tpu.enqueue_dma source(%68 : memref<1x64xf32, #tpu.memory_space<any>>) target(%70 : memref<1x64xf32, #tpu.memory_space<vmem>>) target_semaphore(%72 : memref<!tpu.dma_semaphore, #tpu.memory_space<semaphore_mem>>)
    %c0_i32_56 = arith.constant 0 : i32
    %73 = arith.addi %0, %c0_i32_56 : i32
    %c8_i32 = arith.constant 8 : i32
    %74 = arith.addi %73, %c8_i32 : i32
    %75 = arith.index_cast %74 : i32 to index
    %76 = memref.load %arg1[%75] : memref<64xi32, #tpu.memory_space<smem>>
    %c0_i32_57 = arith.constant 0 : i32
    %c0_i32_58 = arith.constant 0 : i32
    %c8_i32_59 = arith.constant 8 : i32
    %c0_i32_60 = arith.constant 0 : i32
    %77 = tpu.memref_slice %arg2[%76, %c0_i32_60] : memref<100x64xf32, #tpu.memory_space<any>> -> memref<1x64xf32, #tpu.memory_space<any>>
    %c8_i32_61 = arith.constant 8 : i32
    %c0_i32_62 = arith.constant 0 : i32
    %78 = tpu.memref_slice %arg5[%c0_i32_57, %c8_i32_61, %c0_i32_62] : memref<2x16x64xf32, #tpu.memory_space<vmem>> -> memref<1x1x64xf32, #tpu.memory_space<vmem>>
    %79 = tpu.memref_squeeze %78 : memref<1x1x64xf32, #tpu.memory_space<vmem>> -> memref<1x64xf32, #tpu.memory_space<vmem>>
    %80 = tpu.memref_slice %arg6[%c0_i32_58, %c8_i32_59] : memref<2x16x!tpu.dma_semaphore, #tpu.memory_space<semaphore_mem>> -> memref<1x1x!tpu.dma_semaphore, #tpu.memory_space<semaphore_mem>>
    %81 = tpu.memref_squeeze %80 : memref<1x1x!tpu.dma_semaphore, #tpu.memory_space<semaphore_mem>> -> memref<!tpu.dma_semaphore, #tpu.memory_space<semaphore_mem>>
    tpu.enqueue_dma source(%77 : memref<1x64xf32, #tpu.memory_space<any>>) target(%79 : memref<1x64xf32, #tpu.memory_space<vmem>>) target_semaphore(%81 : memref<!tpu.dma_semaphore, #tpu.memory_space<semaphore_mem>>)
    %c0_i32_63 = arith.constant 0 : i32
    %82 = arith.addi %0, %c0_i32_63 : i32
    %c9_i32 = arith.constant 9 : i32
    %83 = arith.addi %82, %c9_i32 : i32
    %84 = arith.index_cast %83 : i32 to index
    %85 = memref.load %arg1[%84] : memref<64xi32, #tpu.memory_space<smem>>
    %c0_i32_64 = arith.constant 0 : i32
    %c0_i32_65 = arith.constant 0 : i32
    %c9_i32_66 = arith.constant 9 : i32
    %c0_i32_67 = arith.constant 0 : i32
    %86 = tpu.memref_slice %arg2[%85, %c0_i32_67] : memref<100x64xf32, #tpu.memory_space<any>> -> memref<1x64xf32, #tpu.memory_space<any>>
    %c9_i32_68 = arith.constant 9 : i32
    %c0_i32_69 = arith.constant 0 : i32
    %87 = tpu.memref_slice %arg5[%c0_i32_64, %c9_i32_68, %c0_i32_69] : memref<2x16x64xf32, #tpu.memory_space<vmem>> -> memref<1x1x64xf32, #tpu.memory_space<vmem>>
    %88 = tpu.memref_squeeze %87 : memref<1x1x64xf32, #tpu.memory_space<vmem>> -> memref<1x64xf32, #tpu.memory_space<vmem>>
    %89 = tpu.memref_slice %arg6[%c0_i32_65, %c9_i32_66] : memref<2x16x!tpu.dma_semaphore, #tpu.memory_space<semaphore_mem>> -> memref<1x1x!tpu.dma_semaphore, #tpu.memory_space<semaphore_mem>>
    %90 = tpu.memref_squeeze %89 : memref<1x1x!tpu.dma_semaphore, #tpu.memory_space<semaphore_mem>> -> memref<!tpu.dma_semaphore, #tpu.memory_space<semaphore_mem>>
    tpu.enqueue_dma source(%86 : memref<1x64xf32, #tpu.memory_space<any>>) target(%88 : memref<1x64xf32, #tpu.memory_space<vmem>>) target_semaphore(%90 : memref<!tpu.dma_semaphore, #tpu.memory_space<semaphore_mem>>)
    %c0_i32_70 = arith.constant 0 : i32
    %91 = arith.addi %0, %c0_i32_70 : i32
    %c10_i32 = arith.constant 10 : i32
    %92 = arith.addi %91, %c10_i32 : i32
    %93 = arith.index_cast %92 : i32 to index
    %94 = memref.load %arg1[%93] : memref<64xi32, #tpu.memory_space<smem>>
    %c0_i32_71 = arith.constant 0 : i32
    %c0_i32_72 = arith.constant 0 : i32
    %c10_i32_73 = arith.constant 10 : i32
    %c0_i32_74 = arith.constant 0 : i32
    %95 = tpu.memref_slice %arg2[%94, %c0_i32_74] : memref<100x64xf32, #tpu.memory_space<any>> -> memref<1x64xf32, #tpu.memory_space<any>>
    %c10_i32_75 = arith.constant 10 : i32
    %c0_i32_76 = arith.constant 0 : i32
    %96 = tpu.memref_slice %arg5[%c0_i32_71, %c10_i32_75, %c0_i32_76] : memref<2x16x64xf32, #tpu.memory_space<vmem>> -> memref<1x1x64xf32, #tpu.memory_space<vmem>>
    %97 = tpu.memref_squeeze %96 : memref<1x1x64xf32, #tpu.memory_space<vmem>> -> memref<1x64xf32, #tpu.memory_space<vmem>>
    %98 = tpu.memref_slice %arg6[%c0_i32_72, %c10_i32_73] : memref<2x16x!tpu.dma_semaphore, #tpu.memory_space<semaphore_mem>> -> memref<1x1x!tpu.dma_semaphore, #tpu.memory_space<semaphore_mem>>
    %99 = tpu.memref_squeeze %98 : memref<1x1x!tpu.dma_semaphore, #tpu.memory_space<semaphore_mem>> -> memref<!tpu.dma_semaphore, #tpu.memory_space<semaphore_mem>>
    tpu.enqueue_dma source(%95 : memref<1x64xf32, #tpu.memory_space<any>>) target(%97 : memref<1x64xf32, #tpu.memory_space<vmem>>) target_semaphore(%99 : memref<!tpu.dma_semaphore, #tpu.memory_space<semaphore_mem>>)
    %c0_i32_77 = arith.constant 0 : i32
    %100 = arith.addi %0, %c0_i32_77 : i32
    %c11_i32 = arith.constant 11 : i32
    %101 = arith.addi %100, %c11_i32 : i32
    %102 = arith.index_cast %101 : i32 to index
    %103 = memref.load %arg1[%102] : memref<64xi32, #tpu.memory_space<smem>>
    %c0_i32_78 = arith.constant 0 : i32
    %c0_i32_79 = arith.constant 0 : i32
    %c11_i32_80 = arith.constant 11 : i32
    %c0_i32_81 = arith.constant 0 : i32
    %104 = tpu.memref_slice %arg2[%103, %c0_i32_81] : memref<100x64xf32, #tpu.memory_space<any>> -> memref<1x64xf32, #tpu.memory_space<any>>
    %c11_i32_82 = arith.constant 11 : i32
    %c0_i32_83 = arith.constant 0 : i32
    %105 = tpu.memref_slice %arg5[%c0_i32_78, %c11_i32_82, %c0_i32_83] : memref<2x16x64xf32, #tpu.memory_space<vmem>> -> memref<1x1x64xf32, #tpu.memory_space<vmem>>
    %106 = tpu.memref_squeeze %105 : memref<1x1x64xf32, #tpu.memory_space<vmem>> -> memref<1x64xf32, #tpu.memory_space<vmem>>
    %107 = tpu.memref_slice %arg6[%c0_i32_79, %c11_i32_80] : memref<2x16x!tpu.dma_semaphore, #tpu.memory_space<semaphore_mem>> -> memref<1x1x!tpu.dma_semaphore, #tpu.memory_space<semaphore_mem>>
    %108 = tpu.memref_squeeze %107 : memref<1x1x!tpu.dma_semaphore, #tpu.memory_space<semaphore_mem>> -> memref<!tpu.dma_semaphore, #tpu.memory_space<semaphore_mem>>
    tpu.enqueue_dma source(%104 : memref<1x64xf32, #tpu.memory_space<any>>) target(%106 : memref<1x64xf32, #tpu.memory_space<vmem>>) target_semaphore(%108 : memref<!tpu.dma_semaphore, #tpu.memory_space<semaphore_mem>>)
    %c0_i32_84 = arith.constant 0 : i32
    %109 = arith.addi %0, %c0_i32_84 : i32
    %c12_i32 = arith.constant 12 : i32
    %110 = arith.addi %109, %c12_i32 : i32
    %111 = arith.index_cast %110 : i32 to index
    %112 = memref.load %arg1[%111] : memref<64xi32, #tpu.memory_space<smem>>
    %c0_i32_85 = arith.constant 0 : i32
    %c0_i32_86 = arith.constant 0 : i32
    %c12_i32_87 = arith.constant 12 : i32
    %c0_i32_88 = arith.constant 0 : i32
    %113 = tpu.memref_slice %arg2[%112, %c0_i32_88] : memref<100x64xf32, #tpu.memory_space<any>> -> memref<1x64xf32, #tpu.memory_space<any>>
    %c12_i32_89 = arith.constant 12 : i32
    %c0_i32_90 = arith.constant 0 : i32
    %114 = tpu.memref_slice %arg5[%c0_i32_85, %c12_i32_89, %c0_i32_90] : memref<2x16x64xf32, #tpu.memory_space<vmem>> -> memref<1x1x64xf32, #tpu.memory_space<vmem>>
    %115 = tpu.memref_squeeze %114 : memref<1x1x64xf32, #tpu.memory_space<vmem>> -> memref<1x64xf32, #tpu.memory_space<vmem>>
    %116 = tpu.memref_slice %arg6[%c0_i32_86, %c12_i32_87] : memref<2x16x!tpu.dma_semaphore, #tpu.memory_space<semaphore_mem>> -> memref<1x1x!tpu.dma_semaphore, #tpu.memory_space<semaphore_mem>>
    %117 = tpu.memref_squeeze %116 : memref<1x1x!tpu.dma_semaphore, #tpu.memory_space<semaphore_mem>> -> memref<!tpu.dma_semaphore, #tpu.memory_space<semaphore_mem>>
    tpu.enqueue_dma source(%113 : memref<1x64xf32, #tpu.memory_space<any>>) target(%115 : memref<1x64xf32, #tpu.memory_space<vmem>>) target_semaphore(%117 : memref<!tpu.dma_semaphore, #tpu.memory_space<semaphore_mem>>)
    %c0_i32_91 = arith.constant 0 : i32
    %118 = arith.addi %0, %c0_i32_91 : i32
    %c13_i32 = arith.constant 13 : i32
    %119 = arith.addi %118, %c13_i32 : i32
    %120 = arith.index_cast %119 : i32 to index
    %121 = memref.load %arg1[%120] : memref<64xi32, #tpu.memory_space<smem>>
    %c0_i32_92 = arith.constant 0 : i32
    %c0_i32_93 = arith.constant 0 : i32
    %c13_i32_94 = arith.constant 13 : i32
    %c0_i32_95 = arith.constant 0 : i32
    %122 = tpu.memref_slice %arg2[%121, %c0_i32_95] : memref<100x64xf32, #tpu.memory_space<any>> -> memref<1x64xf32, #tpu.memory_space<any>>
    %c13_i32_96 = arith.constant 13 : i32
    %c0_i32_97 = arith.constant 0 : i32
    %123 = tpu.memref_slice %arg5[%c0_i32_92, %c13_i32_96, %c0_i32_97] : memref<2x16x64xf32, #tpu.memory_space<vmem>> -> memref<1x1x64xf32, #tpu.memory_space<vmem>>
    %124 = tpu.memref_squeeze %123 : memref<1x1x64xf32, #tpu.memory_space<vmem>> -> memref<1x64xf32, #tpu.memory_space<vmem>>
    %125 = tpu.memref_slice %arg6[%c0_i32_93, %c13_i32_94] : memref<2x16x!tpu.dma_semaphore, #tpu.memory_space<semaphore_mem>> -> memref<1x1x!tpu.dma_semaphore, #tpu.memory_space<semaphore_mem>>
    %126 = tpu.memref_squeeze %125 : memref<1x1x!tpu.dma_semaphore, #tpu.memory_space<semaphore_mem>> -> memref<!tpu.dma_semaphore, #tpu.memory_space<semaphore_mem>>
    tpu.enqueue_dma source(%122 : memref<1x64xf32, #tpu.memory_space<any>>) target(%124 : memref<1x64xf32, #tpu.memory_space<vmem>>) target_semaphore(%126 : memref<!tpu.dma_semaphore, #tpu.memory_space<semaphore_mem>>)
    %c0_i32_98 = arith.constant 0 : i32
    %127 = arith.addi %0, %c0_i32_98 : i32
    %c14_i32 = arith.constant 14 : i32
    %128 = arith.addi %127, %c14_i32 : i32
    %129 = arith.index_cast %128 : i32 to index
    %130 = memref.load %arg1[%129] : memref<64xi32, #tpu.memory_space<smem>>
    %c0_i32_99 = arith.constant 0 : i32
    %c0_i32_100 = arith.constant 0 : i32
    %c14_i32_101 = arith.constant 14 : i32
    %c0_i32_102 = arith.constant 0 : i32
    %131 = tpu.memref_slice %arg2[%130, %c0_i32_102] : memref<100x64xf32, #tpu.memory_space<any>> -> memref<1x64xf32, #tpu.memory_space<any>>
    %c14_i32_103 = arith.constant 14 : i32
    %c0_i32_104 = arith.constant 0 : i32
    %132 = tpu.memref_slice %arg5[%c0_i32_99, %c14_i32_103, %c0_i32_104] : memref<2x16x64xf32, #tpu.memory_space<vmem>> -> memref<1x1x64xf32, #tpu.memory_space<vmem>>
    %133 = tpu.memref_squeeze %132 : memref<1x1x64xf32, #tpu.memory_space<vmem>> -> memref<1x64xf32, #tpu.memory_space<vmem>>
    %134 = tpu.memref_slice %arg6[%c0_i32_100, %c14_i32_101] : memref<2x16x!tpu.dma_semaphore, #tpu.memory_space<semaphore_mem>> -> memref<1x1x!tpu.dma_semaphore, #tpu.memory_space<semaphore_mem>>
    %135 = tpu.memref_squeeze %134 : memref<1x1x!tpu.dma_semaphore, #tpu.memory_space<semaphore_mem>> -> memref<!tpu.dma_semaphore, #tpu.memory_space<semaphore_mem>>
    tpu.enqueue_dma source(%131 : memref<1x64xf32, #tpu.memory_space<any>>) target(%133 : memref<1x64xf32, #tpu.memory_space<vmem>>) target_semaphore(%135 : memref<!tpu.dma_semaphore, #tpu.memory_space<semaphore_mem>>)
    %c0_i32_105 = arith.constant 0 : i32
    %136 = arith.addi %0, %c0_i32_105 : i32
    %c15_i32 = arith.constant 15 : i32
    %137 = arith.addi %136, %c15_i32 : i32
    %138 = arith.index_cast %137 : i32 to index
    %139 = memref.load %arg1[%138] : memref<64xi32, #tpu.memory_space<smem>>
    %c0_i32_106 = arith.constant 0 : i32
    %c0_i32_107 = arith.constant 0 : i32
    %c15_i32_108 = arith.constant 15 : i32
    %c0_i32_109 = arith.constant 0 : i32
    %140 = tpu.memref_slice %arg2[%139, %c0_i32_109] : memref<100x64xf32, #tpu.memory_space<any>> -> memref<1x64xf32, #tpu.memory_space<any>>
    %c15_i32_110 = arith.constant 15 : i32
    %c0_i32_111 = arith.constant 0 : i32
    %141 = tpu.memref_slice %arg5[%c0_i32_106, %c15_i32_110, %c0_i32_111] : memref<2x16x64xf32, #tpu.memory_space<vmem>> -> memref<1x1x64xf32, #tpu.memory_space<vmem>>
    %142 = tpu.memref_squeeze %141 : memref<1x1x64xf32, #tpu.memory_space<vmem>> -> memref<1x64xf32, #tpu.memory_space<vmem>>
    %143 = tpu.memref_slice %arg6[%c0_i32_107, %c15_i32_108] : memref<2x16x!tpu.dma_semaphore, #tpu.memory_space<semaphore_mem>> -> memref<1x1x!tpu.dma_semaphore, #tpu.memory_space<semaphore_mem>>
    %144 = tpu.memref_squeeze %143 : memref<1x1x!tpu.dma_semaphore, #tpu.memory_space<semaphore_mem>> -> memref<!tpu.dma_semaphore, #tpu.memory_space<semaphore_mem>>
    tpu.enqueue_dma source(%140 : memref<1x64xf32, #tpu.memory_space<any>>) target(%142 : memref<1x64xf32, #tpu.memory_space<vmem>>) target_semaphore(%144 : memref<!tpu.dma_semaphore, #tpu.memory_space<semaphore_mem>>)
    %c16_i32 = arith.constant 16 : i32
    %145 = arith.addi %0, %c16_i32 : i32
    %c0_i32_112 = arith.constant 0 : i32
    %146 = arith.addi %145, %c0_i32_112 : i32
    %147 = arith.index_cast %146 : i32 to index
    %148 = memref.load %arg1[%147] : memref<64xi32, #tpu.memory_space<smem>>
    %c1_i32_113 = arith.constant 1 : i32
    %c1_i32_114 = arith.constant 1 : i32
    %c0_i32_115 = arith.constant 0 : i32
    %c0_i32_116 = arith.constant 0 : i32
    %149 = tpu.memref_slice %arg2[%148, %c0_i32_116] : memref<100x64xf32, #tpu.memory_space<any>> -> memref<1x64xf32, #tpu.memory_space<any>>
    %c0_i32_117 = arith.constant 0 : i32
    %c0_i32_118 = arith.constant 0 : i32
    %150 = tpu.memref_slice %arg5[%c1_i32_113, %c0_i32_117, %c0_i32_118] : memref<2x16x64xf32, #tpu.memory_space<vmem>> -> memref<1x1x64xf32, #tpu.memory_space<vmem>>
    %151 = tpu.memref_squeeze %150 : memref<1x1x64xf32, #tpu.memory_space<vmem>> -> memref<1x64xf32, #tpu.memory_space<vmem>>
    %152 = tpu.memref_slice %arg6[%c1_i32_114, %c0_i32_115] : memref<2x16x!tpu.dma_semaphore, #tpu.memory_space<semaphore_mem>> -> memref<1x1x!tpu.dma_semaphore, #tpu.memory_space<semaphore_mem>>
    %153 = tpu.memref_squeeze %152 : memref<1x1x!tpu.dma_semaphore, #tpu.memory_space<semaphore_mem>> -> memref<!tpu.dma_semaphore, #tpu.memory_space<semaphore_mem>>
    tpu.enqueue_dma source(%149 : memref<1x64xf32, #tpu.memory_space<any>>) target(%151 : memref<1x64xf32, #tpu.memory_space<vmem>>) target_semaphore(%153 : memref<!tpu.dma_semaphore, #tpu.memory_space<semaphore_mem>>)
    %c16_i32_119 = arith.constant 16 : i32
    %154 = arith.addi %0, %c16_i32_119 : i32
    %c1_i32_120 = arith.constant 1 : i32
    %155 = arith.addi %154, %c1_i32_120 : i32
    %156 = arith.index_cast %155 : i32 to index
    %157 = memref.load %arg1[%156] : memref<64xi32, #tpu.memory_space<smem>>
    %c1_i32_121 = arith.constant 1 : i32
    %c1_i32_122 = arith.constant 1 : i32
    %c1_i32_123 = arith.constant 1 : i32
    %c0_i32_124 = arith.constant 0 : i32
    %158 = tpu.memref_slice %arg2[%157, %c0_i32_124] : memref<100x64xf32, #tpu.memory_space<any>> -> memref<1x64xf32, #tpu.memory_space<any>>
    %c1_i32_125 = arith.constant 1 : i32
    %c0_i32_126 = arith.constant 0 : i32
    %159 = tpu.memref_slice %arg5[%c1_i32_121, %c1_i32_125, %c0_i32_126] : memref<2x16x64xf32, #tpu.memory_space<vmem>> -> memref<1x1x64xf32, #tpu.memory_space<vmem>>
    %160 = tpu.memref_squeeze %159 : memref<1x1x64xf32, #tpu.memory_space<vmem>> -> memref<1x64xf32, #tpu.memory_space<vmem>>
    %161 = tpu.memref_slice %arg6[%c1_i32_122, %c1_i32_123] : memref<2x16x!tpu.dma_semaphore, #tpu.memory_space<semaphore_mem>> -> memref<1x1x!tpu.dma_semaphore, #tpu.memory_space<semaphore_mem>>
    %162 = tpu.memref_squeeze %161 : memref<1x1x!tpu.dma_semaphore, #tpu.memory_space<semaphore_mem>> -> memref<!tpu.dma_semaphore, #tpu.memory_space<semaphore_mem>>
    tpu.enqueue_dma source(%158 : memref<1x64xf32, #tpu.memory_space<any>>) target(%160 : memref<1x64xf32, #tpu.memory_space<vmem>>) target_semaphore(%162 : memref<!tpu.dma_semaphore, #tpu.memory_space<semaphore_mem>>)
    %c16_i32_127 = arith.constant 16 : i32
    %163 = arith.addi %0, %c16_i32_127 : i32
    %c2_i32_128 = arith.constant 2 : i32
    %164 = arith.addi %163, %c2_i32_128 : i32
    %165 = arith.index_cast %164 : i32 to index
    %166 = memref.load %arg1[%165] : memref<64xi32, #tpu.memory_space<smem>>
    %c1_i32_129 = arith.constant 1 : i32
    %c1_i32_130 = arith.constant 1 : i32
    %c2_i32_131 = arith.constant 2 : i32
    %c0_i32_132 = arith.constant 0 : i32
    %167 = tpu.memref_slice %arg2[%166, %c0_i32_132] : memref<100x64xf32, #tpu.memory_space<any>> -> memref<1x64xf32, #tpu.memory_space<any>>
    %c2_i32_133 = arith.constant 2 : i32
    %c0_i32_134 = arith.constant 0 : i32
    %168 = tpu.memref_slice %arg5[%c1_i32_129, %c2_i32_133, %c0_i32_134] : memref<2x16x64xf32, #tpu.memory_space<vmem>> -> memref<1x1x64xf32, #tpu.memory_space<vmem>>
    %169 = tpu.memref_squeeze %168 : memref<1x1x64xf32, #tpu.memory_space<vmem>> -> memref<1x64xf32, #tpu.memory_space<vmem>>
    %170 = tpu.memref_slice %arg6[%c1_i32_130, %c2_i32_131] : memref<2x16x!tpu.dma_semaphore, #tpu.memory_space<semaphore_mem>> -> memref<1x1x!tpu.dma_semaphore, #tpu.memory_space<semaphore_mem>>
    %171 = tpu.memref_squeeze %170 : memref<1x1x!tpu.dma_semaphore, #tpu.memory_space<semaphore_mem>> -> memref<!tpu.dma_semaphore, #tpu.memory_space<semaphore_mem>>
    tpu.enqueue_dma source(%167 : memref<1x64xf32, #tpu.memory_space<any>>) target(%169 : memref<1x64xf32, #tpu.memory_space<vmem>>) target_semaphore(%171 : memref<!tpu.dma_semaphore, #tpu.memory_space<semaphore_mem>>)
    %c16_i32_135 = arith.constant 16 : i32
    %172 = arith.addi %0, %c16_i32_135 : i32
    %c3_i32_136 = arith.constant 3 : i32
    %173 = arith.addi %172, %c3_i32_136 : i32
    %174 = arith.index_cast %173 : i32 to index
    %175 = memref.load %arg1[%174] : memref<64xi32, #tpu.memory_space<smem>>
    %c1_i32_137 = arith.constant 1 : i32
    %c1_i32_138 = arith.constant 1 : i32
    %c3_i32_139 = arith.constant 3 : i32
    %c0_i32_140 = arith.constant 0 : i32
    %176 = tpu.memref_slice %arg2[%175, %c0_i32_140] : memref<100x64xf32, #tpu.memory_space<any>> -> memref<1x64xf32, #tpu.memory_space<any>>
    %c3_i32_141 = arith.constant 3 : i32
    %c0_i32_142 = arith.constant 0 : i32
    %177 = tpu.memref_slice %arg5[%c1_i32_137, %c3_i32_141, %c0_i32_142] : memref<2x16x64xf32, #tpu.memory_space<vmem>> -> memref<1x1x64xf32, #tpu.memory_space<vmem>>
    %178 = tpu.memref_squeeze %177 : memref<1x1x64xf32, #tpu.memory_space<vmem>> -> memref<1x64xf32, #tpu.memory_space<vmem>>
    %179 = tpu.memref_slice %arg6[%c1_i32_138, %c3_i32_139] : memref<2x16x!tpu.dma_semaphore, #tpu.memory_space<semaphore_mem>> -> memref<1x1x!tpu.dma_semaphore, #tpu.memory_space<semaphore_mem>>
    %180 = tpu.memref_squeeze %179 : memref<1x1x!tpu.dma_semaphore, #tpu.memory_space<semaphore_mem>> -> memref<!tpu.dma_semaphore, #tpu.memory_space<semaphore_mem>>
    tpu.enqueue_dma source(%176 : memref<1x64xf32, #tpu.memory_space<any>>) target(%178 : memref<1x64xf32, #tpu.memory_space<vmem>>) target_semaphore(%180 : memref<!tpu.dma_semaphore, #tpu.memory_space<semaphore_mem>>)
    %c16_i32_143 = arith.constant 16 : i32
    %181 = arith.addi %0, %c16_i32_143 : i32
    %c4_i32_144 = arith.constant 4 : i32
    %182 = arith.addi %181, %c4_i32_144 : i32
    %183 = arith.index_cast %182 : i32 to index
    %184 = memref.load %arg1[%183] : memref<64xi32, #tpu.memory_space<smem>>
    %c1_i32_145 = arith.constant 1 : i32
    %c1_i32_146 = arith.constant 1 : i32
    %c4_i32_147 = arith.constant 4 : i32
    %c0_i32_148 = arith.constant 0 : i32
    %185 = tpu.memref_slice %arg2[%184, %c0_i32_148] : memref<100x64xf32, #tpu.memory_space<any>> -> memref<1x64xf32, #tpu.memory_space<any>>
    %c4_i32_149 = arith.constant 4 : i32
    %c0_i32_150 = arith.constant 0 : i32
    %186 = tpu.memref_slice %arg5[%c1_i32_145, %c4_i32_149, %c0_i32_150] : memref<2x16x64xf32, #tpu.memory_space<vmem>> -> memref<1x1x64xf32, #tpu.memory_space<vmem>>
    %187 = tpu.memref_squeeze %186 : memref<1x1x64xf32, #tpu.memory_space<vmem>> -> memref<1x64xf32, #tpu.memory_space<vmem>>
    %188 = tpu.memref_slice %arg6[%c1_i32_146, %c4_i32_147] : memref<2x16x!tpu.dma_semaphore, #tpu.memory_space<semaphore_mem>> -> memref<1x1x!tpu.dma_semaphore, #tpu.memory_space<semaphore_mem>>
    %189 = tpu.memref_squeeze %188 : memref<1x1x!tpu.dma_semaphore, #tpu.memory_space<semaphore_mem>> -> memref<!tpu.dma_semaphore, #tpu.memory_space<semaphore_mem>>
    tpu.enqueue_dma source(%185 : memref<1x64xf32, #tpu.memory_space<any>>) target(%187 : memref<1x64xf32, #tpu.memory_space<vmem>>) target_semaphore(%189 : memref<!tpu.dma_semaphore, #tpu.memory_space<semaphore_mem>>)
    %c16_i32_151 = arith.constant 16 : i32
    %190 = arith.addi %0, %c16_i32_151 : i32
    %c5_i32_152 = arith.constant 5 : i32
    %191 = arith.addi %190, %c5_i32_152 : i32
    %192 = arith.index_cast %191 : i32 to index
    %193 = memref.load %arg1[%192] : memref<64xi32, #tpu.memory_space<smem>>
    %c1_i32_153 = arith.constant 1 : i32
    %c1_i32_154 = arith.constant 1 : i32
    %c5_i32_155 = arith.constant 5 : i32
    %c0_i32_156 = arith.constant 0 : i32
    %194 = tpu.memref_slice %arg2[%193, %c0_i32_156] : memref<100x64xf32, #tpu.memory_space<any>> -> memref<1x64xf32, #tpu.memory_space<any>>
    %c5_i32_157 = arith.constant 5 : i32
    %c0_i32_158 = arith.constant 0 : i32
    %195 = tpu.memref_slice %arg5[%c1_i32_153, %c5_i32_157, %c0_i32_158] : memref<2x16x64xf32, #tpu.memory_space<vmem>> -> memref<1x1x64xf32, #tpu.memory_space<vmem>>
    %196 = tpu.memref_squeeze %195 : memref<1x1x64xf32, #tpu.memory_space<vmem>> -> memref<1x64xf32, #tpu.memory_space<vmem>>
    %197 = tpu.memref_slice %arg6[%c1_i32_154, %c5_i32_155] : memref<2x16x!tpu.dma_semaphore, #tpu.memory_space<semaphore_mem>> -> memref<1x1x!tpu.dma_semaphore, #tpu.memory_space<semaphore_mem>>
    %198 = tpu.memref_squeeze %197 : memref<1x1x!tpu.dma_semaphore, #tpu.memory_space<semaphore_mem>> -> memref<!tpu.dma_semaphore, #tpu.memory_space<semaphore_mem>>
    tpu.enqueue_dma source(%194 : memref<1x64xf32, #tpu.memory_space<any>>) target(%196 : memref<1x64xf32, #tpu.memory_space<vmem>>) target_semaphore(%198 : memref<!tpu.dma_semaphore, #tpu.memory_space<semaphore_mem>>)
    %c16_i32_159 = arith.constant 16 : i32
    %199 = arith.addi %0, %c16_i32_159 : i32
    %c6_i32_160 = arith.constant 6 : i32
    %200 = arith.addi %199, %c6_i32_160 : i32
    %201 = arith.index_cast %200 : i32 to index
    %202 = memref.load %arg1[%201] : memref<64xi32, #tpu.memory_space<smem>>
    %c1_i32_161 = arith.constant 1 : i32
    %c1_i32_162 = arith.constant 1 : i32
    %c6_i32_163 = arith.constant 6 : i32
    %c0_i32_164 = arith.constant 0 : i32
    %203 = tpu.memref_slice %arg2[%202, %c0_i32_164] : memref<100x64xf32, #tpu.memory_space<any>> -> memref<1x64xf32, #tpu.memory_space<any>>
    %c6_i32_165 = arith.constant 6 : i32
    %c0_i32_166 = arith.constant 0 : i32
    %204 = tpu.memref_slice %arg5[%c1_i32_161, %c6_i32_165, %c0_i32_166] : memref<2x16x64xf32, #tpu.memory_space<vmem>> -> memref<1x1x64xf32, #tpu.memory_space<vmem>>
    %205 = tpu.memref_squeeze %204 : memref<1x1x64xf32, #tpu.memory_space<vmem>> -> memref<1x64xf32, #tpu.memory_space<vmem>>
    %206 = tpu.memref_slice %arg6[%c1_i32_162, %c6_i32_163] : memref<2x16x!tpu.dma_semaphore, #tpu.memory_space<semaphore_mem>> -> memref<1x1x!tpu.dma_semaphore, #tpu.memory_space<semaphore_mem>>
    %207 = tpu.memref_squeeze %206 : memref<1x1x!tpu.dma_semaphore, #tpu.memory_space<semaphore_mem>> -> memref<!tpu.dma_semaphore, #tpu.memory_space<semaphore_mem>>
    tpu.enqueue_dma source(%203 : memref<1x64xf32, #tpu.memory_space<any>>) target(%205 : memref<1x64xf32, #tpu.memory_space<vmem>>) target_semaphore(%207 : memref<!tpu.dma_semaphore, #tpu.memory_space<semaphore_mem>>)
    %c16_i32_167 = arith.constant 16 : i32
    %208 = arith.addi %0, %c16_i32_167 : i32
    %c7_i32_168 = arith.constant 7 : i32
    %209 = arith.addi %208, %c7_i32_168 : i32
    %210 = arith.index_cast %209 : i32 to index
    %211 = memref.load %arg1[%210] : memref<64xi32, #tpu.memory_space<smem>>
    %c1_i32_169 = arith.constant 1 : i32
    %c1_i32_170 = arith.constant 1 : i32
    %c7_i32_171 = arith.constant 7 : i32
    %c0_i32_172 = arith.constant 0 : i32
    %212 = tpu.memref_slice %arg2[%211, %c0_i32_172] : memref<100x64xf32, #tpu.memory_space<any>> -> memref<1x64xf32, #tpu.memory_space<any>>
    %c7_i32_173 = arith.constant 7 : i32
    %c0_i32_174 = arith.constant 0 : i32
    %213 = tpu.memref_slice %arg5[%c1_i32_169, %c7_i32_173, %c0_i32_174] : memref<2x16x64xf32, #tpu.memory_space<vmem>> -> memref<1x1x64xf32, #tpu.memory_space<vmem>>
    %214 = tpu.memref_squeeze %213 : memref<1x1x64xf32, #tpu.memory_space<vmem>> -> memref<1x64xf32, #tpu.memory_space<vmem>>
    %215 = tpu.memref_slice %arg6[%c1_i32_170, %c7_i32_171] : memref<2x16x!tpu.dma_semaphore, #tpu.memory_space<semaphore_mem>> -> memref<1x1x!tpu.dma_semaphore, #tpu.memory_space<semaphore_mem>>
    %216 = tpu.memref_squeeze %215 : memref<1x1x!tpu.dma_semaphore, #tpu.memory_space<semaphore_mem>> -> memref<!tpu.dma_semaphore, #tpu.memory_space<semaphore_mem>>
    tpu.enqueue_dma source(%212 : memref<1x64xf32, #tpu.memory_space<any>>) target(%214 : memref<1x64xf32, #tpu.memory_space<vmem>>) target_semaphore(%216 : memref<!tpu.dma_semaphore, #tpu.memory_space<semaphore_mem>>)
    %c16_i32_175 = arith.constant 16 : i32
    %217 = arith.addi %0, %c16_i32_175 : i32
    %c8_i32_176 = arith.constant 8 : i32
    %218 = arith.addi %217, %c8_i32_176 : i32
    %219 = arith.index_cast %218 : i32 to index
    %220 = memref.load %arg1[%219] : memref<64xi32, #tpu.memory_space<smem>>
    %c1_i32_177 = arith.constant 1 : i32
    %c1_i32_178 = arith.constant 1 : i32
    %c8_i32_179 = arith.constant 8 : i32
    %c0_i32_180 = arith.constant 0 : i32
    %221 = tpu.memref_slice %arg2[%220, %c0_i32_180] : memref<100x64xf32, #tpu.memory_space<any>> -> memref<1x64xf32, #tpu.memory_space<any>>
    %c8_i32_181 = arith.constant 8 : i32
    %c0_i32_182 = arith.constant 0 : i32
    %222 = tpu.memref_slice %arg5[%c1_i32_177, %c8_i32_181, %c0_i32_182] : memref<2x16x64xf32, #tpu.memory_space<vmem>> -> memref<1x1x64xf32, #tpu.memory_space<vmem>>
    %223 = tpu.memref_squeeze %222 : memref<1x1x64xf32, #tpu.memory_space<vmem>> -> memref<1x64xf32, #tpu.memory_space<vmem>>
    %224 = tpu.memref_slice %arg6[%c1_i32_178, %c8_i32_179] : memref<2x16x!tpu.dma_semaphore, #tpu.memory_space<semaphore_mem>> -> memref<1x1x!tpu.dma_semaphore, #tpu.memory_space<semaphore_mem>>
    %225 = tpu.memref_squeeze %224 : memref<1x1x!tpu.dma_semaphore, #tpu.memory_space<semaphore_mem>> -> memref<!tpu.dma_semaphore, #tpu.memory_space<semaphore_mem>>
    tpu.enqueue_dma source(%221 : memref<1x64xf32, #tpu.memory_space<any>>) target(%223 : memref<1x64xf32, #tpu.memory_space<vmem>>) target_semaphore(%225 : memref<!tpu.dma_semaphore, #tpu.memory_space<semaphore_mem>>)
    %c16_i32_183 = arith.constant 16 : i32
    %226 = arith.addi %0, %c16_i32_183 : i32
    %c9_i32_184 = arith.constant 9 : i32
    %227 = arith.addi %226, %c9_i32_184 : i32
    %228 = arith.index_cast %227 : i32 to index
    %229 = memref.load %arg1[%228] : memref<64xi32, #tpu.memory_space<smem>>
    %c1_i32_185 = arith.constant 1 : i32
    %c1_i32_186 = arith.constant 1 : i32
    %c9_i32_187 = arith.constant 9 : i32
    %c0_i32_188 = arith.constant 0 : i32
    %230 = tpu.memref_slice %arg2[%229, %c0_i32_188] : memref<100x64xf32, #tpu.memory_space<any>> -> memref<1x64xf32, #tpu.memory_space<any>>
    %c9_i32_189 = arith.constant 9 : i32
    %c0_i32_190 = arith.constant 0 : i32
    %231 = tpu.memref_slice %arg5[%c1_i32_185, %c9_i32_189, %c0_i32_190] : memref<2x16x64xf32, #tpu.memory_space<vmem>> -> memref<1x1x64xf32, #tpu.memory_space<vmem>>
    %232 = tpu.memref_squeeze %231 : memref<1x1x64xf32, #tpu.memory_space<vmem>> -> memref<1x64xf32, #tpu.memory_space<vmem>>
    %233 = tpu.memref_slice %arg6[%c1_i32_186, %c9_i32_187] : memref<2x16x!tpu.dma_semaphore, #tpu.memory_space<semaphore_mem>> -> memref<1x1x!tpu.dma_semaphore, #tpu.memory_space<semaphore_mem>>
    %234 = tpu.memref_squeeze %233 : memref<1x1x!tpu.dma_semaphore, #tpu.memory_space<semaphore_mem>> -> memref<!tpu.dma_semaphore, #tpu.memory_space<semaphore_mem>>
    tpu.enqueue_dma source(%230 : memref<1x64xf32, #tpu.memory_space<any>>) target(%232 : memref<1x64xf32, #tpu.memory_space<vmem>>) target_semaphore(%234 : memref<!tpu.dma_semaphore, #tpu.memory_space<semaphore_mem>>)
    %c16_i32_191 = arith.constant 16 : i32
    %235 = arith.addi %0, %c16_i32_191 : i32
    %c10_i32_192 = arith.constant 10 : i32
    %236 = arith.addi %235, %c10_i32_192 : i32
    %237 = arith.index_cast %236 : i32 to index
    %238 = memref.load %arg1[%237] : memref<64xi32, #tpu.memory_space<smem>>
    %c1_i32_193 = arith.constant 1 : i32
    %c1_i32_194 = arith.constant 1 : i32
    %c10_i32_195 = arith.constant 10 : i32
    %c0_i32_196 = arith.constant 0 : i32
    %239 = tpu.memref_slice %arg2[%238, %c0_i32_196] : memref<100x64xf32, #tpu.memory_space<any>> -> memref<1x64xf32, #tpu.memory_space<any>>
    %c10_i32_197 = arith.constant 10 : i32
    %c0_i32_198 = arith.constant 0 : i32
    %240 = tpu.memref_slice %arg5[%c1_i32_193, %c10_i32_197, %c0_i32_198] : memref<2x16x64xf32, #tpu.memory_space<vmem>> -> memref<1x1x64xf32, #tpu.memory_space<vmem>>
    %241 = tpu.memref_squeeze %240 : memref<1x1x64xf32, #tpu.memory_space<vmem>> -> memref<1x64xf32, #tpu.memory_space<vmem>>
    %242 = tpu.memref_slice %arg6[%c1_i32_194, %c10_i32_195] : memref<2x16x!tpu.dma_semaphore, #tpu.memory_space<semaphore_mem>> -> memref<1x1x!tpu.dma_semaphore, #tpu.memory_space<semaphore_mem>>
    %243 = tpu.memref_squeeze %242 : memref<1x1x!tpu.dma_semaphore, #tpu.memory_space<semaphore_mem>> -> memref<!tpu.dma_semaphore, #tpu.memory_space<semaphore_mem>>
    tpu.enqueue_dma source(%239 : memref<1x64xf32, #tpu.memory_space<any>>) target(%241 : memref<1x64xf32, #tpu.memory_space<vmem>>) target_semaphore(%243 : memref<!tpu.dma_semaphore, #tpu.memory_space<semaphore_mem>>)
    %c16_i32_199 = arith.constant 16 : i32
    %244 = arith.addi %0, %c16_i32_199 : i32
    %c11_i32_200 = arith.constant 11 : i32
    %245 = arith.addi %244, %c11_i32_200 : i32
    %246 = arith.index_cast %245 : i32 to index
    %247 = memref.load %arg1[%246] : memref<64xi32, #tpu.memory_space<smem>>
    %c1_i32_201 = arith.constant 1 : i32
    %c1_i32_202 = arith.constant 1 : i32
    %c11_i32_203 = arith.constant 11 : i32
    %c0_i32_204 = arith.constant 0 : i32
    %248 = tpu.memref_slice %arg2[%247, %c0_i32_204] : memref<100x64xf32, #tpu.memory_space<any>> -> memref<1x64xf32, #tpu.memory_space<any>>
    %c11_i32_205 = arith.constant 11 : i32
    %c0_i32_206 = arith.constant 0 : i32
    %249 = tpu.memref_slice %arg5[%c1_i32_201, %c11_i32_205, %c0_i32_206] : memref<2x16x64xf32, #tpu.memory_space<vmem>> -> memref<1x1x64xf32, #tpu.memory_space<vmem>>
    %250 = tpu.memref_squeeze %249 : memref<1x1x64xf32, #tpu.memory_space<vmem>> -> memref<1x64xf32, #tpu.memory_space<vmem>>
    %251 = tpu.memref_slice %arg6[%c1_i32_202, %c11_i32_203] : memref<2x16x!tpu.dma_semaphore, #tpu.memory_space<semaphore_mem>> -> memref<1x1x!tpu.dma_semaphore, #tpu.memory_space<semaphore_mem>>
    %252 = tpu.memref_squeeze %251 : memref<1x1x!tpu.dma_semaphore, #tpu.memory_space<semaphore_mem>> -> memref<!tpu.dma_semaphore, #tpu.memory_space<semaphore_mem>>
    tpu.enqueue_dma source(%248 : memref<1x64xf32, #tpu.memory_space<any>>) target(%250 : memref<1x64xf32, #tpu.memory_space<vmem>>) target_semaphore(%252 : memref<!tpu.dma_semaphore, #tpu.memory_space<semaphore_mem>>)
    %c16_i32_207 = arith.constant 16 : i32
    %253 = arith.addi %0, %c16_i32_207 : i32
    %c12_i32_208 = arith.constant 12 : i32
    %254 = arith.addi %253, %c12_i32_208 : i32
    %255 = arith.index_cast %254 : i32 to index
    %256 = memref.load %arg1[%255] : memref<64xi32, #tpu.memory_space<smem>>
    %c1_i32_209 = arith.constant 1 : i32
    %c1_i32_210 = arith.constant 1 : i32
    %c12_i32_211 = arith.constant 12 : i32
    %c0_i32_212 = arith.constant 0 : i32
    %257 = tpu.memref_slice %arg2[%256, %c0_i32_212] : memref<100x64xf32, #tpu.memory_space<any>> -> memref<1x64xf32, #tpu.memory_space<any>>
    %c12_i32_213 = arith.constant 12 : i32
    %c0_i32_214 = arith.constant 0 : i32
    %258 = tpu.memref_slice %arg5[%c1_i32_209, %c12_i32_213, %c0_i32_214] : memref<2x16x64xf32, #tpu.memory_space<vmem>> -> memref<1x1x64xf32, #tpu.memory_space<vmem>>
    %259 = tpu.memref_squeeze %258 : memref<1x1x64xf32, #tpu.memory_space<vmem>> -> memref<1x64xf32, #tpu.memory_space<vmem>>
    %260 = tpu.memref_slice %arg6[%c1_i32_210, %c12_i32_211] : memref<2x16x!tpu.dma_semaphore, #tpu.memory_space<semaphore_mem>> -> memref<1x1x!tpu.dma_semaphore, #tpu.memory_space<semaphore_mem>>
    %261 = tpu.memref_squeeze %260 : memref<1x1x!tpu.dma_semaphore, #tpu.memory_space<semaphore_mem>> -> memref<!tpu.dma_semaphore, #tpu.memory_space<semaphore_mem>>
    tpu.enqueue_dma source(%257 : memref<1x64xf32, #tpu.memory_space<any>>) target(%259 : memref<1x64xf32, #tpu.memory_space<vmem>>) target_semaphore(%261 : memref<!tpu.dma_semaphore, #tpu.memory_space<semaphore_mem>>)
    %c16_i32_215 = arith.constant 16 : i32
    %262 = arith.addi %0, %c16_i32_215 : i32
    %c13_i32_216 = arith.constant 13 : i32
    %263 = arith.addi %262, %c13_i32_216 : i32
    %264 = arith.index_cast %263 : i32 to index
    %265 = memref.load %arg1[%264] : memref<64xi32, #tpu.memory_space<smem>>
    %c1_i32_217 = arith.constant 1 : i32
    %c1_i32_218 = arith.constant 1 : i32
    %c13_i32_219 = arith.constant 13 : i32
    %c0_i32_220 = arith.constant 0 : i32
    %266 = tpu.memref_slice %arg2[%265, %c0_i32_220] : memref<100x64xf32, #tpu.memory_space<any>> -> memref<1x64xf32, #tpu.memory_space<any>>
    %c13_i32_221 = arith.constant 13 : i32
    %c0_i32_222 = arith.constant 0 : i32
    %267 = tpu.memref_slice %arg5[%c1_i32_217, %c13_i32_221, %c0_i32_222] : memref<2x16x64xf32, #tpu.memory_space<vmem>> -> memref<1x1x64xf32, #tpu.memory_space<vmem>>
    %268 = tpu.memref_squeeze %267 : memref<1x1x64xf32, #tpu.memory_space<vmem>> -> memref<1x64xf32, #tpu.memory_space<vmem>>
    %269 = tpu.memref_slice %arg6[%c1_i32_218, %c13_i32_219] : memref<2x16x!tpu.dma_semaphore, #tpu.memory_space<semaphore_mem>> -> memref<1x1x!tpu.dma_semaphore, #tpu.memory_space<semaphore_mem>>
    %270 = tpu.memref_squeeze %269 : memref<1x1x!tpu.dma_semaphore, #tpu.memory_space<semaphore_mem>> -> memref<!tpu.dma_semaphore, #tpu.memory_space<semaphore_mem>>
    tpu.enqueue_dma source(%266 : memref<1x64xf32, #tpu.memory_space<any>>) target(%268 : memref<1x64xf32, #tpu.memory_space<vmem>>) target_semaphore(%270 : memref<!tpu.dma_semaphore, #tpu.memory_space<semaphore_mem>>)
    %c16_i32_223 = arith.constant 16 : i32
    %271 = arith.addi %0, %c16_i32_223 : i32
    %c14_i32_224 = arith.constant 14 : i32
    %272 = arith.addi %271, %c14_i32_224 : i32
    %273 = arith.index_cast %272 : i32 to index
    %274 = memref.load %arg1[%273] : memref<64xi32, #tpu.memory_space<smem>>
    %c1_i32_225 = arith.constant 1 : i32
    %c1_i32_226 = arith.constant 1 : i32
    %c14_i32_227 = arith.constant 14 : i32
    %c0_i32_228 = arith.constant 0 : i32
    %275 = tpu.memref_slice %arg2[%274, %c0_i32_228] : memref<100x64xf32, #tpu.memory_space<any>> -> memref<1x64xf32, #tpu.memory_space<any>>
    %c14_i32_229 = arith.constant 14 : i32
    %c0_i32_230 = arith.constant 0 : i32
    %276 = tpu.memref_slice %arg5[%c1_i32_225, %c14_i32_229, %c0_i32_230] : memref<2x16x64xf32, #tpu.memory_space<vmem>> -> memref<1x1x64xf32, #tpu.memory_space<vmem>>
    %277 = tpu.memref_squeeze %276 : memref<1x1x64xf32, #tpu.memory_space<vmem>> -> memref<1x64xf32, #tpu.memory_space<vmem>>
    %278 = tpu.memref_slice %arg6[%c1_i32_226, %c14_i32_227] : memref<2x16x!tpu.dma_semaphore, #tpu.memory_space<semaphore_mem>> -> memref<1x1x!tpu.dma_semaphore, #tpu.memory_space<semaphore_mem>>
    %279 = tpu.memref_squeeze %278 : memref<1x1x!tpu.dma_semaphore, #tpu.memory_space<semaphore_mem>> -> memref<!tpu.dma_semaphore, #tpu.memory_space<semaphore_mem>>
    tpu.enqueue_dma source(%275 : memref<1x64xf32, #tpu.memory_space<any>>) target(%277 : memref<1x64xf32, #tpu.memory_space<vmem>>) target_semaphore(%279 : memref<!tpu.dma_semaphore, #tpu.memory_space<semaphore_mem>>)
    %c16_i32_231 = arith.constant 16 : i32
    %280 = arith.addi %0, %c16_i32_231 : i32
    %c15_i32_232 = arith.constant 15 : i32
    %281 = arith.addi %280, %c15_i32_232 : i32
    %282 = arith.index_cast %281 : i32 to index
    %283 = memref.load %arg1[%282] : memref<64xi32, #tpu.memory_space<smem>>
    %c1_i32_233 = arith.constant 1 : i32
    %c1_i32_234 = arith.constant 1 : i32
    %c15_i32_235 = arith.constant 15 : i32
    %c0_i32_236 = arith.constant 0 : i32
    %284 = tpu.memref_slice %arg2[%283, %c0_i32_236] : memref<100x64xf32, #tpu.memory_space<any>> -> memref<1x64xf32, #tpu.memory_space<any>>
    %c15_i32_237 = arith.constant 15 : i32
    %c0_i32_238 = arith.constant 0 : i32
    %285 = tpu.memref_slice %arg5[%c1_i32_233, %c15_i32_237, %c0_i32_238] : memref<2x16x64xf32, #tpu.memory_space<vmem>> -> memref<1x1x64xf32, #tpu.memory_space<vmem>>
    %286 = tpu.memref_squeeze %285 : memref<1x1x64xf32, #tpu.memory_space<vmem>> -> memref<1x64xf32, #tpu.memory_space<vmem>>
    %287 = tpu.memref_slice %arg6[%c1_i32_234, %c15_i32_235] : memref<2x16x!tpu.dma_semaphore, #tpu.memory_space<semaphore_mem>> -> memref<1x1x!tpu.dma_semaphore, #tpu.memory_space<semaphore_mem>>
    %288 = tpu.memref_squeeze %287 : memref<1x1x!tpu.dma_semaphore, #tpu.memory_space<semaphore_mem>> -> memref<!tpu.dma_semaphore, #tpu.memory_space<semaphore_mem>>
    tpu.enqueue_dma source(%284 : memref<1x64xf32, #tpu.memory_space<any>>) target(%286 : memref<1x64xf32, #tpu.memory_space<vmem>>) target_semaphore(%288 : memref<!tpu.dma_semaphore, #tpu.memory_space<semaphore_mem>>)
    %c0_i32_239 = arith.constant 0 : i32
    %c0_i32_240 = arith.constant 0 : i32
    %c0_i32_241 = arith.constant 0 : i32
    %c0_i32_242 = arith.constant 0 : i32
    %289 = tpu.memref_slice %arg2[%4, %c0_i32_242] : memref<100x64xf32, #tpu.memory_space<any>> -> memref<1x64xf32, #tpu.memory_space<any>>
    %c0_i32_243 = arith.constant 0 : i32
    %c0_i32_244 = arith.constant 0 : i32
    %290 = tpu.memref_slice %arg5[%c0_i32_239, %c0_i32_243, %c0_i32_244] : memref<2x16x64xf32, #tpu.memory_space<vmem>> -> memref<1x1x64xf32, #tpu.memory_space<vmem>>
    %291 = tpu.memref_squeeze %290 : memref<1x1x64xf32, #tpu.memory_space<vmem>> -> memref<1x64xf32, #tpu.memory_space<vmem>>
    %292 = tpu.memref_slice %arg6[%c0_i32_240, %c0_i32_241] : memref<2x16x!tpu.dma_semaphore, #tpu.memory_space<semaphore_mem>> -> memref<1x1x!tpu.dma_semaphore, #tpu.memory_space<semaphore_mem>>
    %293 = tpu.memref_squeeze %292 : memref<1x1x!tpu.dma_semaphore, #tpu.memory_space<semaphore_mem>> -> memref<!tpu.dma_semaphore, #tpu.memory_space<semaphore_mem>>
    tpu.wait_dma2 semaphore(%293 : memref<!tpu.dma_semaphore, #tpu.memory_space<semaphore_mem>>) src(%289 : memref<1x64xf32, #tpu.memory_space<any>>) dst(%291 : memref<1x64xf32, #tpu.memory_space<vmem>>)
    %c0_i32_245 = arith.constant 0 : i32
    %c0_i32_246 = arith.constant 0 : i32
    %c1_i32_247 = arith.constant 1 : i32
    %c0_i32_248 = arith.constant 0 : i32
    %294 = tpu.memref_slice %arg2[%13, %c0_i32_248] : memref<100x64xf32, #tpu.memory_space<any>> -> memref<1x64xf32, #tpu.memory_space<any>>
    %c1_i32_249 = arith.constant 1 : i32
    %c0_i32_250 = arith.constant 0 : i32
    %295 = tpu.memref_slice %arg5[%c0_i32_245, %c1_i32_249, %c0_i32_250] : memref<2x16x64xf32, #tpu.memory_space<vmem>> -> memref<1x1x64xf32, #tpu.memory_space<vmem>>
    %296 = tpu.memref_squeeze %295 : memref<1x1x64xf32, #tpu.memory_space<vmem>> -> memref<1x64xf32, #tpu.memory_space<vmem>>
    %297 = tpu.memref_slice %arg6[%c0_i32_246, %c1_i32_247] : memref<2x16x!tpu.dma_semaphore, #tpu.memory_space<semaphore_mem>> -> memref<1x1x!tpu.dma_semaphore, #tpu.memory_space<semaphore_mem>>
    %298 = tpu.memref_squeeze %297 : memref<1x1x!tpu.dma_semaphore, #tpu.memory_space<semaphore_mem>> -> memref<!tpu.dma_semaphore, #tpu.memory_space<semaphore_mem>>
    tpu.wait_dma2 semaphore(%298 : memref<!tpu.dma_semaphore, #tpu.memory_space<semaphore_mem>>) src(%294 : memref<1x64xf32, #tpu.memory_space<any>>) dst(%296 : memref<1x64xf32, #tpu.memory_space<vmem>>)
    %c0_i32_251 = arith.constant 0 : i32
    %c0_i32_252 = arith.constant 0 : i32
    %c2_i32_253 = arith.constant 2 : i32
    %c0_i32_254 = arith.constant 0 : i32
    %299 = tpu.memref_slice %arg2[%22, %c0_i32_254] : memref<100x64xf32, #tpu.memory_space<any>> -> memref<1x64xf32, #tpu.memory_space<any>>
    %c2_i32_255 = arith.constant 2 : i32
    %c0_i32_256 = arith.constant 0 : i32
    %300 = tpu.memref_slice %arg5[%c0_i32_251, %c2_i32_255, %c0_i32_256] : memref<2x16x64xf32, #tpu.memory_space<vmem>> -> memref<1x1x64xf32, #tpu.memory_space<vmem>>
    %301 = tpu.memref_squeeze %300 : memref<1x1x64xf32, #tpu.memory_space<vmem>> -> memref<1x64xf32, #tpu.memory_space<vmem>>
    %302 = tpu.memref_slice %arg6[%c0_i32_252, %c2_i32_253] : memref<2x16x!tpu.dma_semaphore, #tpu.memory_space<semaphore_mem>> -> memref<1x1x!tpu.dma_semaphore, #tpu.memory_space<semaphore_mem>>
    %303 = tpu.memref_squeeze %302 : memref<1x1x!tpu.dma_semaphore, #tpu.memory_space<semaphore_mem>> -> memref<!tpu.dma_semaphore, #tpu.memory_space<semaphore_mem>>
    tpu.wait_dma2 semaphore(%303 : memref<!tpu.dma_semaphore, #tpu.memory_space<semaphore_mem>>) src(%299 : memref<1x64xf32, #tpu.memory_space<any>>) dst(%301 : memref<1x64xf32, #tpu.memory_space<vmem>>)
    %c0_i32_257 = arith.constant 0 : i32
    %c0_i32_258 = arith.constant 0 : i32
    %c3_i32_259 = arith.constant 3 : i32
    %c0_i32_260 = arith.constant 0 : i32
    %304 = tpu.memref_slice %arg2[%31, %c0_i32_260] : memref<100x64xf32, #tpu.memory_space<any>> -> memref<1x64xf32, #tpu.memory_space<any>>
    %c3_i32_261 = arith.constant 3 : i32
    %c0_i32_262 = arith.constant 0 : i32
    %305 = tpu.memref_slice %arg5[%c0_i32_257, %c3_i32_261, %c0_i32_262] : memref<2x16x64xf32, #tpu.memory_space<vmem>> -> memref<1x1x64xf32, #tpu.memory_space<vmem>>
    %306 = tpu.memref_squeeze %305 : memref<1x1x64xf32, #tpu.memory_space<vmem>> -> memref<1x64xf32, #tpu.memory_space<vmem>>
    %307 = tpu.memref_slice %arg6[%c0_i32_258, %c3_i32_259] : memref<2x16x!tpu.dma_semaphore, #tpu.memory_space<semaphore_mem>> -> memref<1x1x!tpu.dma_semaphore, #tpu.memory_space<semaphore_mem>>
    %308 = tpu.memref_squeeze %307 : memref<1x1x!tpu.dma_semaphore, #tpu.memory_space<semaphore_mem>> -> memref<!tpu.dma_semaphore, #tpu.memory_space<semaphore_mem>>
    tpu.wait_dma2 semaphore(%308 : memref<!tpu.dma_semaphore, #tpu.memory_space<semaphore_mem>>) src(%304 : memref<1x64xf32, #tpu.memory_space<any>>) dst(%306 : memref<1x64xf32, #tpu.memory_space<vmem>>)
    %c0_i32_263 = arith.constant 0 : i32
    %c0_i32_264 = arith.constant 0 : i32
    %c4_i32_265 = arith.constant 4 : i32
    %c0_i32_266 = arith.constant 0 : i32
    %309 = tpu.memref_slice %arg2[%40, %c0_i32_266] : memref<100x64xf32, #tpu.memory_space<any>> -> memref<1x64xf32, #tpu.memory_space<any>>
    %c4_i32_267 = arith.constant 4 : i32
    %c0_i32_268 = arith.constant 0 : i32
    %310 = tpu.memref_slice %arg5[%c0_i32_263, %c4_i32_267, %c0_i32_268] : memref<2x16x64xf32, #tpu.memory_space<vmem>> -> memref<1x1x64xf32, #tpu.memory_space<vmem>>
    %311 = tpu.memref_squeeze %310 : memref<1x1x64xf32, #tpu.memory_space<vmem>> -> memref<1x64xf32, #tpu.memory_space<vmem>>
    %312 = tpu.memref_slice %arg6[%c0_i32_264, %c4_i32_265] : memref<2x16x!tpu.dma_semaphore, #tpu.memory_space<semaphore_mem>> -> memref<1x1x!tpu.dma_semaphore, #tpu.memory_space<semaphore_mem>>
    %313 = tpu.memref_squeeze %312 : memref<1x1x!tpu.dma_semaphore, #tpu.memory_space<semaphore_mem>> -> memref<!tpu.dma_semaphore, #tpu.memory_space<semaphore_mem>>
    tpu.wait_dma2 semaphore(%313 : memref<!tpu.dma_semaphore, #tpu.memory_space<semaphore_mem>>) src(%309 : memref<1x64xf32, #tpu.memory_space<any>>) dst(%311 : memref<1x64xf32, #tpu.memory_space<vmem>>)
    %c0_i32_269 = arith.constant 0 : i32
    %c0_i32_270 = arith.constant 0 : i32
    %c5_i32_271 = arith.constant 5 : i32
    %c0_i32_272 = arith.constant 0 : i32
    %314 = tpu.memref_slice %arg2[%49, %c0_i32_272] : memref<100x64xf32, #tpu.memory_space<any>> -> memref<1x64xf32, #tpu.memory_space<any>>
    %c5_i32_273 = arith.constant 5 : i32
    %c0_i32_274 = arith.constant 0 : i32
    %315 = tpu.memref_slice %arg5[%c0_i32_269, %c5_i32_273, %c0_i32_274] : memref<2x16x64xf32, #tpu.memory_space<vmem>> -> memref<1x1x64xf32, #tpu.memory_space<vmem>>
    %316 = tpu.memref_squeeze %315 : memref<1x1x64xf32, #tpu.memory_space<vmem>> -> memref<1x64xf32, #tpu.memory_space<vmem>>
    %317 = tpu.memref_slice %arg6[%c0_i32_270, %c5_i32_271] : memref<2x16x!tpu.dma_semaphore, #tpu.memory_space<semaphore_mem>> -> memref<1x1x!tpu.dma_semaphore, #tpu.memory_space<semaphore_mem>>
    %318 = tpu.memref_squeeze %317 : memref<1x1x!tpu.dma_semaphore, #tpu.memory_space<semaphore_mem>> -> memref<!tpu.dma_semaphore, #tpu.memory_space<semaphore_mem>>
    tpu.wait_dma2 semaphore(%318 : memref<!tpu.dma_semaphore, #tpu.memory_space<semaphore_mem>>) src(%314 : memref<1x64xf32, #tpu.memory_space<any>>) dst(%316 : memref<1x64xf32, #tpu.memory_space<vmem>>)
    %c0_i32_275 = arith.constant 0 : i32
    %c0_i32_276 = arith.constant 0 : i32
    %c6_i32_277 = arith.constant 6 : i32
    %c0_i32_278 = arith.constant 0 : i32
    %319 = tpu.memref_slice %arg2[%58, %c0_i32_278] : memref<100x64xf32, #tpu.memory_space<any>> -> memref<1x64xf32, #tpu.memory_space<any>>
    %c6_i32_279 = arith.constant 6 : i32
    %c0_i32_280 = arith.constant 0 : i32
    %320 = tpu.memref_slice %arg5[%c0_i32_275, %c6_i32_279, %c0_i32_280] : memref<2x16x64xf32, #tpu.memory_space<vmem>> -> memref<1x1x64xf32, #tpu.memory_space<vmem>>
    %321 = tpu.memref_squeeze %320 : memref<1x1x64xf32, #tpu.memory_space<vmem>> -> memref<1x64xf32, #tpu.memory_space<vmem>>
    %322 = tpu.memref_slice %arg6[%c0_i32_276, %c6_i32_277] : memref<2x16x!tpu.dma_semaphore, #tpu.memory_space<semaphore_mem>> -> memref<1x1x!tpu.dma_semaphore, #tpu.memory_space<semaphore_mem>>
    %323 = tpu.memref_squeeze %322 : memref<1x1x!tpu.dma_semaphore, #tpu.memory_space<semaphore_mem>> -> memref<!tpu.dma_semaphore, #tpu.memory_space<semaphore_mem>>
    tpu.wait_dma2 semaphore(%323 : memref<!tpu.dma_semaphore, #tpu.memory_space<semaphore_mem>>) src(%319 : memref<1x64xf32, #tpu.memory_space<any>>) dst(%321 : memref<1x64xf32, #tpu.memory_space<vmem>>)
    %c0_i32_281 = arith.constant 0 : i32
    %c0_i32_282 = arith.constant 0 : i32
    %c7_i32_283 = arith.constant 7 : i32
    %c0_i32_284 = arith.constant 0 : i32
    %324 = tpu.memref_slice %arg2[%67, %c0_i32_284] : memref<100x64xf32, #tpu.memory_space<any>> -> memref<1x64xf32, #tpu.memory_space<any>>
    %c7_i32_285 = arith.constant 7 : i32
    %c0_i32_286 = arith.constant 0 : i32
    %325 = tpu.memref_slice %arg5[%c0_i32_281, %c7_i32_285, %c0_i32_286] : memref<2x16x64xf32, #tpu.memory_space<vmem>> -> memref<1x1x64xf32, #tpu.memory_space<vmem>>
    %326 = tpu.memref_squeeze %325 : memref<1x1x64xf32, #tpu.memory_space<vmem>> -> memref<1x64xf32, #tpu.memory_space<vmem>>
    %327 = tpu.memref_slice %arg6[%c0_i32_282, %c7_i32_283] : memref<2x16x!tpu.dma_semaphore, #tpu.memory_space<semaphore_mem>> -> memref<1x1x!tpu.dma_semaphore, #tpu.memory_space<semaphore_mem>>
    %328 = tpu.memref_squeeze %327 : memref<1x1x!tpu.dma_semaphore, #tpu.memory_space<semaphore_mem>> -> memref<!tpu.dma_semaphore, #tpu.memory_space<semaphore_mem>>
    tpu.wait_dma2 semaphore(%328 : memref<!tpu.dma_semaphore, #tpu.memory_space<semaphore_mem>>) src(%324 : memref<1x64xf32, #tpu.memory_space<any>>) dst(%326 : memref<1x64xf32, #tpu.memory_space<vmem>>)
    %c0_i32_287 = arith.constant 0 : i32
    %c0_i32_288 = arith.constant 0 : i32
    %c8_i32_289 = arith.constant 8 : i32
    %c0_i32_290 = arith.constant 0 : i32
    %329 = tpu.memref_slice %arg2[%76, %c0_i32_290] : memref<100x64xf32, #tpu.memory_space<any>> -> memref<1x64xf32, #tpu.memory_space<any>>
    %c8_i32_291 = arith.constant 8 : i32
    %c0_i32_292 = arith.constant 0 : i32
    %330 = tpu.memref_slice %arg5[%c0_i32_287, %c8_i32_291, %c0_i32_292] : memref<2x16x64xf32, #tpu.memory_space<vmem>> -> memref<1x1x64xf32, #tpu.memory_space<vmem>>
    %331 = tpu.memref_squeeze %330 : memref<1x1x64xf32, #tpu.memory_space<vmem>> -> memref<1x64xf32, #tpu.memory_space<vmem>>
    %332 = tpu.memref_slice %arg6[%c0_i32_288, %c8_i32_289] : memref<2x16x!tpu.dma_semaphore, #tpu.memory_space<semaphore_mem>> -> memref<1x1x!tpu.dma_semaphore, #tpu.memory_space<semaphore_mem>>
    %333 = tpu.memref_squeeze %332 : memref<1x1x!tpu.dma_semaphore, #tpu.memory_space<semaphore_mem>> -> memref<!tpu.dma_semaphore, #tpu.memory_space<semaphore_mem>>
    tpu.wait_dma2 semaphore(%333 : memref<!tpu.dma_semaphore, #tpu.memory_space<semaphore_mem>>) src(%329 : memref<1x64xf32, #tpu.memory_space<any>>) dst(%331 : memref<1x64xf32, #tpu.memory_space<vmem>>)
    %c0_i32_293 = arith.constant 0 : i32
    %c0_i32_294 = arith.constant 0 : i32
    %c9_i32_295 = arith.constant 9 : i32
    %c0_i32_296 = arith.constant 0 : i32
    %334 = tpu.memref_slice %arg2[%85, %c0_i32_296] : memref<100x64xf32, #tpu.memory_space<any>> -> memref<1x64xf32, #tpu.memory_space<any>>
    %c9_i32_297 = arith.constant 9 : i32
    %c0_i32_298 = arith.constant 0 : i32
    %335 = tpu.memref_slice %arg5[%c0_i32_293, %c9_i32_297, %c0_i32_298] : memref<2x16x64xf32, #tpu.memory_space<vmem>> -> memref<1x1x64xf32, #tpu.memory_space<vmem>>
    %336 = tpu.memref_squeeze %335 : memref<1x1x64xf32, #tpu.memory_space<vmem>> -> memref<1x64xf32, #tpu.memory_space<vmem>>
    %337 = tpu.memref_slice %arg6[%c0_i32_294, %c9_i32_295] : memref<2x16x!tpu.dma_semaphore, #tpu.memory_space<semaphore_mem>> -> memref<1x1x!tpu.dma_semaphore, #tpu.memory_space<semaphore_mem>>
    %338 = tpu.memref_squeeze %337 : memref<1x1x!tpu.dma_semaphore, #tpu.memory_space<semaphore_mem>> -> memref<!tpu.dma_semaphore, #tpu.memory_space<semaphore_mem>>
    tpu.wait_dma2 semaphore(%338 : memref<!tpu.dma_semaphore, #tpu.memory_space<semaphore_mem>>) src(%334 : memref<1x64xf32, #tpu.memory_space<any>>) dst(%336 : memref<1x64xf32, #tpu.memory_space<vmem>>)
    %c0_i32_299 = arith.constant 0 : i32
    %c0_i32_300 = arith.constant 0 : i32
    %c10_i32_301 = arith.constant 10 : i32
    %c0_i32_302 = arith.constant 0 : i32
    %339 = tpu.memref_slice %arg2[%94, %c0_i32_302] : memref<100x64xf32, #tpu.memory_space<any>> -> memref<1x64xf32, #tpu.memory_space<any>>
    %c10_i32_303 = arith.constant 10 : i32
    %c0_i32_304 = arith.constant 0 : i32
    %340 = tpu.memref_slice %arg5[%c0_i32_299, %c10_i32_303, %c0_i32_304] : memref<2x16x64xf32, #tpu.memory_space<vmem>> -> memref<1x1x64xf32, #tpu.memory_space<vmem>>
    %341 = tpu.memref_squeeze %340 : memref<1x1x64xf32, #tpu.memory_space<vmem>> -> memref<1x64xf32, #tpu.memory_space<vmem>>
    %342 = tpu.memref_slice %arg6[%c0_i32_300, %c10_i32_301] : memref<2x16x!tpu.dma_semaphore, #tpu.memory_space<semaphore_mem>> -> memref<1x1x!tpu.dma_semaphore, #tpu.memory_space<semaphore_mem>>
    %343 = tpu.memref_squeeze %342 : memref<1x1x!tpu.dma_semaphore, #tpu.memory_space<semaphore_mem>> -> memref<!tpu.dma_semaphore, #tpu.memory_space<semaphore_mem>>
    tpu.wait_dma2 semaphore(%343 : memref<!tpu.dma_semaphore, #tpu.memory_space<semaphore_mem>>) src(%339 : memref<1x64xf32, #tpu.memory_space<any>>) dst(%341 : memref<1x64xf32, #tpu.memory_space<vmem>>)
    %c0_i32_305 = arith.constant 0 : i32
    %c0_i32_306 = arith.constant 0 : i32
    %c11_i32_307 = arith.constant 11 : i32
    %c0_i32_308 = arith.constant 0 : i32
    %344 = tpu.memref_slice %arg2[%103, %c0_i32_308] : memref<100x64xf32, #tpu.memory_space<any>> -> memref<1x64xf32, #tpu.memory_space<any>>
    %c11_i32_309 = arith.constant 11 : i32
    %c0_i32_310 = arith.constant 0 : i32
    %345 = tpu.memref_slice %arg5[%c0_i32_305, %c11_i32_309, %c0_i32_310] : memref<2x16x64xf32, #tpu.memory_space<vmem>> -> memref<1x1x64xf32, #tpu.memory_space<vmem>>
    %346 = tpu.memref_squeeze %345 : memref<1x1x64xf32, #tpu.memory_space<vmem>> -> memref<1x64xf32, #tpu.memory_space<vmem>>
    %347 = tpu.memref_slice %arg6[%c0_i32_306, %c11_i32_307] : memref<2x16x!tpu.dma_semaphore, #tpu.memory_space<semaphore_mem>> -> memref<1x1x!tpu.dma_semaphore, #tpu.memory_space<semaphore_mem>>
    %348 = tpu.memref_squeeze %347 : memref<1x1x!tpu.dma_semaphore, #tpu.memory_space<semaphore_mem>> -> memref<!tpu.dma_semaphore, #tpu.memory_space<semaphore_mem>>
    tpu.wait_dma2 semaphore(%348 : memref<!tpu.dma_semaphore, #tpu.memory_space<semaphore_mem>>) src(%344 : memref<1x64xf32, #tpu.memory_space<any>>) dst(%346 : memref<1x64xf32, #tpu.memory_space<vmem>>)
    %c0_i32_311 = arith.constant 0 : i32
    %c0_i32_312 = arith.constant 0 : i32
    %c12_i32_313 = arith.constant 12 : i32
    %c0_i32_314 = arith.constant 0 : i32
    %349 = tpu.memref_slice %arg2[%112, %c0_i32_314] : memref<100x64xf32, #tpu.memory_space<any>> -> memref<1x64xf32, #tpu.memory_space<any>>
    %c12_i32_315 = arith.constant 12 : i32
    %c0_i32_316 = arith.constant 0 : i32
    %350 = tpu.memref_slice %arg5[%c0_i32_311, %c12_i32_315, %c0_i32_316] : memref<2x16x64xf32, #tpu.memory_space<vmem>> -> memref<1x1x64xf32, #tpu.memory_space<vmem>>
    %351 = tpu.memref_squeeze %350 : memref<1x1x64xf32, #tpu.memory_space<vmem>> -> memref<1x64xf32, #tpu.memory_space<vmem>>
    %352 = tpu.memref_slice %arg6[%c0_i32_312, %c12_i32_313] : memref<2x16x!tpu.dma_semaphore, #tpu.memory_space<semaphore_mem>> -> memref<1x1x!tpu.dma_semaphore, #tpu.memory_space<semaphore_mem>>
    %353 = tpu.memref_squeeze %352 : memref<1x1x!tpu.dma_semaphore, #tpu.memory_space<semaphore_mem>> -> memref<!tpu.dma_semaphore, #tpu.memory_space<semaphore_mem>>
    tpu.wait_dma2 semaphore(%353 : memref<!tpu.dma_semaphore, #tpu.memory_space<semaphore_mem>>) src(%349 : memref<1x64xf32, #tpu.memory_space<any>>) dst(%351 : memref<1x64xf32, #tpu.memory_space<vmem>>)
    %c0_i32_317 = arith.constant 0 : i32
    %c0_i32_318 = arith.constant 0 : i32
    %c13_i32_319 = arith.constant 13 : i32
    %c0_i32_320 = arith.constant 0 : i32
    %354 = tpu.memref_slice %arg2[%121, %c0_i32_320] : memref<100x64xf32, #tpu.memory_space<any>> -> memref<1x64xf32, #tpu.memory_space<any>>
    %c13_i32_321 = arith.constant 13 : i32
    %c0_i32_322 = arith.constant 0 : i32
    %355 = tpu.memref_slice %arg5[%c0_i32_317, %c13_i32_321, %c0_i32_322] : memref<2x16x64xf32, #tpu.memory_space<vmem>> -> memref<1x1x64xf32, #tpu.memory_space<vmem>>
    %356 = tpu.memref_squeeze %355 : memref<1x1x64xf32, #tpu.memory_space<vmem>> -> memref<1x64xf32, #tpu.memory_space<vmem>>
    %357 = tpu.memref_slice %arg6[%c0_i32_318, %c13_i32_319] : memref<2x16x!tpu.dma_semaphore, #tpu.memory_space<semaphore_mem>> -> memref<1x1x!tpu.dma_semaphore, #tpu.memory_space<semaphore_mem>>
    %358 = tpu.memref_squeeze %357 : memref<1x1x!tpu.dma_semaphore, #tpu.memory_space<semaphore_mem>> -> memref<!tpu.dma_semaphore, #tpu.memory_space<semaphore_mem>>
    tpu.wait_dma2 semaphore(%358 : memref<!tpu.dma_semaphore, #tpu.memory_space<semaphore_mem>>) src(%354 : memref<1x64xf32, #tpu.memory_space<any>>) dst(%356 : memref<1x64xf32, #tpu.memory_space<vmem>>)
    %c0_i32_323 = arith.constant 0 : i32
    %c0_i32_324 = arith.constant 0 : i32
    %c14_i32_325 = arith.constant 14 : i32
    %c0_i32_326 = arith.constant 0 : i32
    %359 = tpu.memref_slice %arg2[%130, %c0_i32_326] : memref<100x64xf32, #tpu.memory_space<any>> -> memref<1x64xf32, #tpu.memory_space<any>>
    %c14_i32_327 = arith.constant 14 : i32
    %c0_i32_328 = arith.constant 0 : i32
    %360 = tpu.memref_slice %arg5[%c0_i32_323, %c14_i32_327, %c0_i32_328] : memref<2x16x64xf32, #tpu.memory_space<vmem>> -> memref<1x1x64xf32, #tpu.memory_space<vmem>>
    %361 = tpu.memref_squeeze %360 : memref<1x1x64xf32, #tpu.memory_space<vmem>> -> memref<1x64xf32, #tpu.memory_space<vmem>>
    %362 = tpu.memref_slice %arg6[%c0_i32_324, %c14_i32_325] : memref<2x16x!tpu.dma_semaphore, #tpu.memory_space<semaphore_mem>> -> memref<1x1x!tpu.dma_semaphore, #tpu.memory_space<semaphore_mem>>
    %363 = tpu.memref_squeeze %362 : memref<1x1x!tpu.dma_semaphore, #tpu.memory_space<semaphore_mem>> -> memref<!tpu.dma_semaphore, #tpu.memory_space<semaphore_mem>>
    tpu.wait_dma2 semaphore(%363 : memref<!tpu.dma_semaphore, #tpu.memory_space<semaphore_mem>>) src(%359 : memref<1x64xf32, #tpu.memory_space<any>>) dst(%361 : memref<1x64xf32, #tpu.memory_space<vmem>>)
    %c0_i32_329 = arith.constant 0 : i32
    %c0_i32_330 = arith.constant 0 : i32
    %c15_i32_331 = arith.constant 15 : i32
    %c0_i32_332 = arith.constant 0 : i32
    %364 = tpu.memref_slice %arg2[%139, %c0_i32_332] : memref<100x64xf32, #tpu.memory_space<any>> -> memref<1x64xf32, #tpu.memory_space<any>>
    %c15_i32_333 = arith.constant 15 : i32
    %c0_i32_334 = arith.constant 0 : i32
    %365 = tpu.memref_slice %arg5[%c0_i32_329, %c15_i32_333, %c0_i32_334] : memref<2x16x64xf32, #tpu.memory_space<vmem>> -> memref<1x1x64xf32, #tpu.memory_space<vmem>>
    %366 = tpu.memref_squeeze %365 : memref<1x1x64xf32, #tpu.memory_space<vmem>> -> memref<1x64xf32, #tpu.memory_space<vmem>>
    %367 = tpu.memref_slice %arg6[%c0_i32_330, %c15_i32_331] : memref<2x16x!tpu.dma_semaphore, #tpu.memory_space<semaphore_mem>> -> memref<1x1x!tpu.dma_semaphore, #tpu.memory_space<semaphore_mem>>
    %368 = tpu.memref_squeeze %367 : memref<1x1x!tpu.dma_semaphore, #tpu.memory_space<semaphore_mem>> -> memref<!tpu.dma_semaphore, #tpu.memory_space<semaphore_mem>>
    tpu.wait_dma2 semaphore(%368 : memref<!tpu.dma_semaphore, #tpu.memory_space<semaphore_mem>>) src(%364 : memref<1x64xf32, #tpu.memory_space<any>>) dst(%366 : memref<1x64xf32, #tpu.memory_space<vmem>>)
    %c1_i32_335 = arith.constant 1 : i32
    %c1_i32_336 = arith.constant 1 : i32
    %c0_i32_337 = arith.constant 0 : i32
    %c0_i32_338 = arith.constant 0 : i32
    %369 = tpu.memref_slice %arg2[%148, %c0_i32_338] : memref<100x64xf32, #tpu.memory_space<any>> -> memref<1x64xf32, #tpu.memory_space<any>>
    %c0_i32_339 = arith.constant 0 : i32
    %c0_i32_340 = arith.constant 0 : i32
    %370 = tpu.memref_slice %arg5[%c1_i32_335, %c0_i32_339, %c0_i32_340] : memref<2x16x64xf32, #tpu.memory_space<vmem>> -> memref<1x1x64xf32, #tpu.memory_space<vmem>>
    %371 = tpu.memref_squeeze %370 : memref<1x1x64xf32, #tpu.memory_space<vmem>> -> memref<1x64xf32, #tpu.memory_space<vmem>>
    %372 = tpu.memref_slice %arg6[%c1_i32_336, %c0_i32_337] : memref<2x16x!tpu.dma_semaphore, #tpu.memory_space<semaphore_mem>> -> memref<1x1x!tpu.dma_semaphore, #tpu.memory_space<semaphore_mem>>
    %373 = tpu.memref_squeeze %372 : memref<1x1x!tpu.dma_semaphore, #tpu.memory_space<semaphore_mem>> -> memref<!tpu.dma_semaphore, #tpu.memory_space<semaphore_mem>>
    tpu.wait_dma2 semaphore(%373 : memref<!tpu.dma_semaphore, #tpu.memory_space<semaphore_mem>>) src(%369 : memref<1x64xf32, #tpu.memory_space<any>>) dst(%371 : memref<1x64xf32, #tpu.memory_space<vmem>>)
    %c1_i32_341 = arith.constant 1 : i32
    %c1_i32_342 = arith.constant 1 : i32
    %c1_i32_343 = arith.constant 1 : i32
    %c0_i32_344 = arith.constant 0 : i32
    %374 = tpu.memref_slice %arg2[%157, %c0_i32_344] : memref<100x64xf32, #tpu.memory_space<any>> -> memref<1x64xf32, #tpu.memory_space<any>>
    %c1_i32_345 = arith.constant 1 : i32
    %c0_i32_346 = arith.constant 0 : i32
    %375 = tpu.memref_slice %arg5[%c1_i32_341, %c1_i32_345, %c0_i32_346] : memref<2x16x64xf32, #tpu.memory_space<vmem>> -> memref<1x1x64xf32, #tpu.memory_space<vmem>>
    %376 = tpu.memref_squeeze %375 : memref<1x1x64xf32, #tpu.memory_space<vmem>> -> memref<1x64xf32, #tpu.memory_space<vmem>>
    %377 = tpu.memref_slice %arg6[%c1_i32_342, %c1_i32_343] : memref<2x16x!tpu.dma_semaphore, #tpu.memory_space<semaphore_mem>> -> memref<1x1x!tpu.dma_semaphore, #tpu.memory_space<semaphore_mem>>
    %378 = tpu.memref_squeeze %377 : memref<1x1x!tpu.dma_semaphore, #tpu.memory_space<semaphore_mem>> -> memref<!tpu.dma_semaphore, #tpu.memory_space<semaphore_mem>>
    tpu.wait_dma2 semaphore(%378 : memref<!tpu.dma_semaphore, #tpu.memory_space<semaphore_mem>>) src(%374 : memref<1x64xf32, #tpu.memory_space<any>>) dst(%376 : memref<1x64xf32, #tpu.memory_space<vmem>>)
    %c1_i32_347 = arith.constant 1 : i32
    %c1_i32_348 = arith.constant 1 : i32
    %c2_i32_349 = arith.constant 2 : i32
    %c0_i32_350 = arith.constant 0 : i32
    %379 = tpu.memref_slice %arg2[%166, %c0_i32_350] : memref<100x64xf32, #tpu.memory_space<any>> -> memref<1x64xf32, #tpu.memory_space<any>>
    %c2_i32_351 = arith.constant 2 : i32
    %c0_i32_352 = arith.constant 0 : i32
    %380 = tpu.memref_slice %arg5[%c1_i32_347, %c2_i32_351, %c0_i32_352] : memref<2x16x64xf32, #tpu.memory_space<vmem>> -> memref<1x1x64xf32, #tpu.memory_space<vmem>>
    %381 = tpu.memref_squeeze %380 : memref<1x1x64xf32, #tpu.memory_space<vmem>> -> memref<1x64xf32, #tpu.memory_space<vmem>>
    %382 = tpu.memref_slice %arg6[%c1_i32_348, %c2_i32_349] : memref<2x16x!tpu.dma_semaphore, #tpu.memory_space<semaphore_mem>> -> memref<1x1x!tpu.dma_semaphore, #tpu.memory_space<semaphore_mem>>
    %383 = tpu.memref_squeeze %382 : memref<1x1x!tpu.dma_semaphore, #tpu.memory_space<semaphore_mem>> -> memref<!tpu.dma_semaphore, #tpu.memory_space<semaphore_mem>>
    tpu.wait_dma2 semaphore(%383 : memref<!tpu.dma_semaphore, #tpu.memory_space<semaphore_mem>>) src(%379 : memref<1x64xf32, #tpu.memory_space<any>>) dst(%381 : memref<1x64xf32, #tpu.memory_space<vmem>>)
    %c1_i32_353 = arith.constant 1 : i32
    %c1_i32_354 = arith.constant 1 : i32
    %c3_i32_355 = arith.constant 3 : i32
    %c0_i32_356 = arith.constant 0 : i32
    %384 = tpu.memref_slice %arg2[%175, %c0_i32_356] : memref<100x64xf32, #tpu.memory_space<any>> -> memref<1x64xf32, #tpu.memory_space<any>>
    %c3_i32_357 = arith.constant 3 : i32
    %c0_i32_358 = arith.constant 0 : i32
    %385 = tpu.memref_slice %arg5[%c1_i32_353, %c3_i32_357, %c0_i32_358] : memref<2x16x64xf32, #tpu.memory_space<vmem>> -> memref<1x1x64xf32, #tpu.memory_space<vmem>>
    %386 = tpu.memref_squeeze %385 : memref<1x1x64xf32, #tpu.memory_space<vmem>> -> memref<1x64xf32, #tpu.memory_space<vmem>>
    %387 = tpu.memref_slice %arg6[%c1_i32_354, %c3_i32_355] : memref<2x16x!tpu.dma_semaphore, #tpu.memory_space<semaphore_mem>> -> memref<1x1x!tpu.dma_semaphore, #tpu.memory_space<semaphore_mem>>
    %388 = tpu.memref_squeeze %387 : memref<1x1x!tpu.dma_semaphore, #tpu.memory_space<semaphore_mem>> -> memref<!tpu.dma_semaphore, #tpu.memory_space<semaphore_mem>>
    tpu.wait_dma2 semaphore(%388 : memref<!tpu.dma_semaphore, #tpu.memory_space<semaphore_mem>>) src(%384 : memref<1x64xf32, #tpu.memory_space<any>>) dst(%386 : memref<1x64xf32, #tpu.memory_space<vmem>>)
    %c1_i32_359 = arith.constant 1 : i32
    %c1_i32_360 = arith.constant 1 : i32
    %c4_i32_361 = arith.constant 4 : i32
    %c0_i32_362 = arith.constant 0 : i32
    %389 = tpu.memref_slice %arg2[%184, %c0_i32_362] : memref<100x64xf32, #tpu.memory_space<any>> -> memref<1x64xf32, #tpu.memory_space<any>>
    %c4_i32_363 = arith.constant 4 : i32
    %c0_i32_364 = arith.constant 0 : i32
    %390 = tpu.memref_slice %arg5[%c1_i32_359, %c4_i32_363, %c0_i32_364] : memref<2x16x64xf32, #tpu.memory_space<vmem>> -> memref<1x1x64xf32, #tpu.memory_space<vmem>>
    %391 = tpu.memref_squeeze %390 : memref<1x1x64xf32, #tpu.memory_space<vmem>> -> memref<1x64xf32, #tpu.memory_space<vmem>>
    %392 = tpu.memref_slice %arg6[%c1_i32_360, %c4_i32_361] : memref<2x16x!tpu.dma_semaphore, #tpu.memory_space<semaphore_mem>> -> memref<1x1x!tpu.dma_semaphore, #tpu.memory_space<semaphore_mem>>
    %393 = tpu.memref_squeeze %392 : memref<1x1x!tpu.dma_semaphore, #tpu.memory_space<semaphore_mem>> -> memref<!tpu.dma_semaphore, #tpu.memory_space<semaphore_mem>>
    tpu.wait_dma2 semaphore(%393 : memref<!tpu.dma_semaphore, #tpu.memory_space<semaphore_mem>>) src(%389 : memref<1x64xf32, #tpu.memory_space<any>>) dst(%391 : memref<1x64xf32, #tpu.memory_space<vmem>>)
    %c1_i32_365 = arith.constant 1 : i32
    %c1_i32_366 = arith.constant 1 : i32
    %c5_i32_367 = arith.constant 5 : i32
    %c0_i32_368 = arith.constant 0 : i32
    %394 = tpu.memref_slice %arg2[%193, %c0_i32_368] : memref<100x64xf32, #tpu.memory_space<any>> -> memref<1x64xf32, #tpu.memory_space<any>>
    %c5_i32_369 = arith.constant 5 : i32
    %c0_i32_370 = arith.constant 0 : i32
    %395 = tpu.memref_slice %arg5[%c1_i32_365, %c5_i32_369, %c0_i32_370] : memref<2x16x64xf32, #tpu.memory_space<vmem>> -> memref<1x1x64xf32, #tpu.memory_space<vmem>>
    %396 = tpu.memref_squeeze %395 : memref<1x1x64xf32, #tpu.memory_space<vmem>> -> memref<1x64xf32, #tpu.memory_space<vmem>>
    %397 = tpu.memref_slice %arg6[%c1_i32_366, %c5_i32_367] : memref<2x16x!tpu.dma_semaphore, #tpu.memory_space<semaphore_mem>> -> memref<1x1x!tpu.dma_semaphore, #tpu.memory_space<semaphore_mem>>
    %398 = tpu.memref_squeeze %397 : memref<1x1x!tpu.dma_semaphore, #tpu.memory_space<semaphore_mem>> -> memref<!tpu.dma_semaphore, #tpu.memory_space<semaphore_mem>>
    tpu.wait_dma2 semaphore(%398 : memref<!tpu.dma_semaphore, #tpu.memory_space<semaphore_mem>>) src(%394 : memref<1x64xf32, #tpu.memory_space<any>>) dst(%396 : memref<1x64xf32, #tpu.memory_space<vmem>>)
    %c1_i32_371 = arith.constant 1 : i32
    %c1_i32_372 = arith.constant 1 : i32
    %c6_i32_373 = arith.constant 6 : i32
    %c0_i32_374 = arith.constant 0 : i32
    %399 = tpu.memref_slice %arg2[%202, %c0_i32_374] : memref<100x64xf32, #tpu.memory_space<any>> -> memref<1x64xf32, #tpu.memory_space<any>>
    %c6_i32_375 = arith.constant 6 : i32
    %c0_i32_376 = arith.constant 0 : i32
    %400 = tpu.memref_slice %arg5[%c1_i32_371, %c6_i32_375, %c0_i32_376] : memref<2x16x64xf32, #tpu.memory_space<vmem>> -> memref<1x1x64xf32, #tpu.memory_space<vmem>>
    %401 = tpu.memref_squeeze %400 : memref<1x1x64xf32, #tpu.memory_space<vmem>> -> memref<1x64xf32, #tpu.memory_space<vmem>>
    %402 = tpu.memref_slice %arg6[%c1_i32_372, %c6_i32_373] : memref<2x16x!tpu.dma_semaphore, #tpu.memory_space<semaphore_mem>> -> memref<1x1x!tpu.dma_semaphore, #tpu.memory_space<semaphore_mem>>
    %403 = tpu.memref_squeeze %402 : memref<1x1x!tpu.dma_semaphore, #tpu.memory_space<semaphore_mem>> -> memref<!tpu.dma_semaphore, #tpu.memory_space<semaphore_mem>>
    tpu.wait_dma2 semaphore(%403 : memref<!tpu.dma_semaphore, #tpu.memory_space<semaphore_mem>>) src(%399 : memref<1x64xf32, #tpu.memory_space<any>>) dst(%401 : memref<1x64xf32, #tpu.memory_space<vmem>>)
    %c1_i32_377 = arith.constant 1 : i32
    %c1_i32_378 = arith.constant 1 : i32
    %c7_i32_379 = arith.constant 7 : i32
    %c0_i32_380 = arith.constant 0 : i32
    %404 = tpu.memref_slice %arg2[%211, %c0_i32_380] : memref<100x64xf32, #tpu.memory_space<any>> -> memref<1x64xf32, #tpu.memory_space<any>>
    %c7_i32_381 = arith.constant 7 : i32
    %c0_i32_382 = arith.constant 0 : i32
    %405 = tpu.memref_slice %arg5[%c1_i32_377, %c7_i32_381, %c0_i32_382] : memref<2x16x64xf32, #tpu.memory_space<vmem>> -> memref<1x1x64xf32, #tpu.memory_space<vmem>>
    %406 = tpu.memref_squeeze %405 : memref<1x1x64xf32, #tpu.memory_space<vmem>> -> memref<1x64xf32, #tpu.memory_space<vmem>>
    %407 = tpu.memref_slice %arg6[%c1_i32_378, %c7_i32_379] : memref<2x16x!tpu.dma_semaphore, #tpu.memory_space<semaphore_mem>> -> memref<1x1x!tpu.dma_semaphore, #tpu.memory_space<semaphore_mem>>
    %408 = tpu.memref_squeeze %407 : memref<1x1x!tpu.dma_semaphore, #tpu.memory_space<semaphore_mem>> -> memref<!tpu.dma_semaphore, #tpu.memory_space<semaphore_mem>>
    tpu.wait_dma2 semaphore(%408 : memref<!tpu.dma_semaphore, #tpu.memory_space<semaphore_mem>>) src(%404 : memref<1x64xf32, #tpu.memory_space<any>>) dst(%406 : memref<1x64xf32, #tpu.memory_space<vmem>>)
    %c1_i32_383 = arith.constant 1 : i32
    %c1_i32_384 = arith.constant 1 : i32
    %c8_i32_385 = arith.constant 8 : i32
    %c0_i32_386 = arith.constant 0 : i32
    %409 = tpu.memref_slice %arg2[%220, %c0_i32_386] : memref<100x64xf32, #tpu.memory_space<any>> -> memref<1x64xf32, #tpu.memory_space<any>>
    %c8_i32_387 = arith.constant 8 : i32
    %c0_i32_388 = arith.constant 0 : i32
    %410 = tpu.memref_slice %arg5[%c1_i32_383, %c8_i32_387, %c0_i32_388] : memref<2x16x64xf32, #tpu.memory_space<vmem>> -> memref<1x1x64xf32, #tpu.memory_space<vmem>>
    %411 = tpu.memref_squeeze %410 : memref<1x1x64xf32, #tpu.memory_space<vmem>> -> memref<1x64xf32, #tpu.memory_space<vmem>>
    %412 = tpu.memref_slice %arg6[%c1_i32_384, %c8_i32_385] : memref<2x16x!tpu.dma_semaphore, #tpu.memory_space<semaphore_mem>> -> memref<1x1x!tpu.dma_semaphore, #tpu.memory_space<semaphore_mem>>
    %413 = tpu.memref_squeeze %412 : memref<1x1x!tpu.dma_semaphore, #tpu.memory_space<semaphore_mem>> -> memref<!tpu.dma_semaphore, #tpu.memory_space<semaphore_mem>>
    tpu.wait_dma2 semaphore(%413 : memref<!tpu.dma_semaphore, #tpu.memory_space<semaphore_mem>>) src(%409 : memref<1x64xf32, #tpu.memory_space<any>>) dst(%411 : memref<1x64xf32, #tpu.memory_space<vmem>>)
    %c1_i32_389 = arith.constant 1 : i32
    %c1_i32_390 = arith.constant 1 : i32
    %c9_i32_391 = arith.constant 9 : i32
    %c0_i32_392 = arith.constant 0 : i32
    %414 = tpu.memref_slice %arg2[%229, %c0_i32_392] : memref<100x64xf32, #tpu.memory_space<any>> -> memref<1x64xf32, #tpu.memory_space<any>>
    %c9_i32_393 = arith.constant 9 : i32
    %c0_i32_394 = arith.constant 0 : i32
    %415 = tpu.memref_slice %arg5[%c1_i32_389, %c9_i32_393, %c0_i32_394] : memref<2x16x64xf32, #tpu.memory_space<vmem>> -> memref<1x1x64xf32, #tpu.memory_space<vmem>>
    %416 = tpu.memref_squeeze %415 : memref<1x1x64xf32, #tpu.memory_space<vmem>> -> memref<1x64xf32, #tpu.memory_space<vmem>>
    %417 = tpu.memref_slice %arg6[%c1_i32_390, %c9_i32_391] : memref<2x16x!tpu.dma_semaphore, #tpu.memory_space<semaphore_mem>> -> memref<1x1x!tpu.dma_semaphore, #tpu.memory_space<semaphore_mem>>
    %418 = tpu.memref_squeeze %417 : memref<1x1x!tpu.dma_semaphore, #tpu.memory_space<semaphore_mem>> -> memref<!tpu.dma_semaphore, #tpu.memory_space<semaphore_mem>>
    tpu.wait_dma2 semaphore(%418 : memref<!tpu.dma_semaphore, #tpu.memory_space<semaphore_mem>>) src(%414 : memref<1x64xf32, #tpu.memory_space<any>>) dst(%416 : memref<1x64xf32, #tpu.memory_space<vmem>>)
    %c1_i32_395 = arith.constant 1 : i32
    %c1_i32_396 = arith.constant 1 : i32
    %c10_i32_397 = arith.constant 10 : i32
    %c0_i32_398 = arith.constant 0 : i32
    %419 = tpu.memref_slice %arg2[%238, %c0_i32_398] : memref<100x64xf32, #tpu.memory_space<any>> -> memref<1x64xf32, #tpu.memory_space<any>>
    %c10_i32_399 = arith.constant 10 : i32
    %c0_i32_400 = arith.constant 0 : i32
    %420 = tpu.memref_slice %arg5[%c1_i32_395, %c10_i32_399, %c0_i32_400] : memref<2x16x64xf32, #tpu.memory_space<vmem>> -> memref<1x1x64xf32, #tpu.memory_space<vmem>>
    %421 = tpu.memref_squeeze %420 : memref<1x1x64xf32, #tpu.memory_space<vmem>> -> memref<1x64xf32, #tpu.memory_space<vmem>>
    %422 = tpu.memref_slice %arg6[%c1_i32_396, %c10_i32_397] : memref<2x16x!tpu.dma_semaphore, #tpu.memory_space<semaphore_mem>> -> memref<1x1x!tpu.dma_semaphore, #tpu.memory_space<semaphore_mem>>
    %423 = tpu.memref_squeeze %422 : memref<1x1x!tpu.dma_semaphore, #tpu.memory_space<semaphore_mem>> -> memref<!tpu.dma_semaphore, #tpu.memory_space<semaphore_mem>>
    tpu.wait_dma2 semaphore(%423 : memref<!tpu.dma_semaphore, #tpu.memory_space<semaphore_mem>>) src(%419 : memref<1x64xf32, #tpu.memory_space<any>>) dst(%421 : memref<1x64xf32, #tpu.memory_space<vmem>>)
    %c1_i32_401 = arith.constant 1 : i32
    %c1_i32_402 = arith.constant 1 : i32
    %c11_i32_403 = arith.constant 11 : i32
    %c0_i32_404 = arith.constant 0 : i32
    %424 = tpu.memref_slice %arg2[%247, %c0_i32_404] : memref<100x64xf32, #tpu.memory_space<any>> -> memref<1x64xf32, #tpu.memory_space<any>>
    %c11_i32_405 = arith.constant 11 : i32
    %c0_i32_406 = arith.constant 0 : i32
    %425 = tpu.memref_slice %arg5[%c1_i32_401, %c11_i32_405, %c0_i32_406] : memref<2x16x64xf32, #tpu.memory_space<vmem>> -> memref<1x1x64xf32, #tpu.memory_space<vmem>>
    %426 = tpu.memref_squeeze %425 : memref<1x1x64xf32, #tpu.memory_space<vmem>> -> memref<1x64xf32, #tpu.memory_space<vmem>>
    %427 = tpu.memref_slice %arg6[%c1_i32_402, %c11_i32_403] : memref<2x16x!tpu.dma_semaphore, #tpu.memory_space<semaphore_mem>> -> memref<1x1x!tpu.dma_semaphore, #tpu.memory_space<semaphore_mem>>
    %428 = tpu.memref_squeeze %427 : memref<1x1x!tpu.dma_semaphore, #tpu.memory_space<semaphore_mem>> -> memref<!tpu.dma_semaphore, #tpu.memory_space<semaphore_mem>>
    tpu.wait_dma2 semaphore(%428 : memref<!tpu.dma_semaphore, #tpu.memory_space<semaphore_mem>>) src(%424 : memref<1x64xf32, #tpu.memory_space<any>>) dst(%426 : memref<1x64xf32, #tpu.memory_space<vmem>>)
    %c1_i32_407 = arith.constant 1 : i32
    %c1_i32_408 = arith.constant 1 : i32
    %c12_i32_409 = arith.constant 12 : i32
    %c0_i32_410 = arith.constant 0 : i32
    %429 = tpu.memref_slice %arg2[%256, %c0_i32_410] : memref<100x64xf32, #tpu.memory_space<any>> -> memref<1x64xf32, #tpu.memory_space<any>>
    %c12_i32_411 = arith.constant 12 : i32
    %c0_i32_412 = arith.constant 0 : i32
    %430 = tpu.memref_slice %arg5[%c1_i32_407, %c12_i32_411, %c0_i32_412] : memref<2x16x64xf32, #tpu.memory_space<vmem>> -> memref<1x1x64xf32, #tpu.memory_space<vmem>>
    %431 = tpu.memref_squeeze %430 : memref<1x1x64xf32, #tpu.memory_space<vmem>> -> memref<1x64xf32, #tpu.memory_space<vmem>>
    %432 = tpu.memref_slice %arg6[%c1_i32_408, %c12_i32_409] : memref<2x16x!tpu.dma_semaphore, #tpu.memory_space<semaphore_mem>> -> memref<1x1x!tpu.dma_semaphore, #tpu.memory_space<semaphore_mem>>
    %433 = tpu.memref_squeeze %432 : memref<1x1x!tpu.dma_semaphore, #tpu.memory_space<semaphore_mem>> -> memref<!tpu.dma_semaphore, #tpu.memory_space<semaphore_mem>>
    tpu.wait_dma2 semaphore(%433 : memref<!tpu.dma_semaphore, #tpu.memory_space<semaphore_mem>>) src(%429 : memref<1x64xf32, #tpu.memory_space<any>>) dst(%431 : memref<1x64xf32, #tpu.memory_space<vmem>>)
    %c1_i32_413 = arith.constant 1 : i32
    %c1_i32_414 = arith.constant 1 : i32
    %c13_i32_415 = arith.constant 13 : i32
    %c0_i32_416 = arith.constant 0 : i32
    %434 = tpu.memref_slice %arg2[%265, %c0_i32_416] : memref<100x64xf32, #tpu.memory_space<any>> -> memref<1x64xf32, #tpu.memory_space<any>>
    %c13_i32_417 = arith.constant 13 : i32
    %c0_i32_418 = arith.constant 0 : i32
    %435 = tpu.memref_slice %arg5[%c1_i32_413, %c13_i32_417, %c0_i32_418] : memref<2x16x64xf32, #tpu.memory_space<vmem>> -> memref<1x1x64xf32, #tpu.memory_space<vmem>>
    %436 = tpu.memref_squeeze %435 : memref<1x1x64xf32, #tpu.memory_space<vmem>> -> memref<1x64xf32, #tpu.memory_space<vmem>>
    %437 = tpu.memref_slice %arg6[%c1_i32_414, %c13_i32_415] : memref<2x16x!tpu.dma_semaphore, #tpu.memory_space<semaphore_mem>> -> memref<1x1x!tpu.dma_semaphore, #tpu.memory_space<semaphore_mem>>
    %438 = tpu.memref_squeeze %437 : memref<1x1x!tpu.dma_semaphore, #tpu.memory_space<semaphore_mem>> -> memref<!tpu.dma_semaphore, #tpu.memory_space<semaphore_mem>>
    tpu.wait_dma2 semaphore(%438 : memref<!tpu.dma_semaphore, #tpu.memory_space<semaphore_mem>>) src(%434 : memref<1x64xf32, #tpu.memory_space<any>>) dst(%436 : memref<1x64xf32, #tpu.memory_space<vmem>>)
    %c1_i32_419 = arith.constant 1 : i32
    %c1_i32_420 = arith.constant 1 : i32
    %c14_i32_421 = arith.constant 14 : i32
    %c0_i32_422 = arith.constant 0 : i32
    %439 = tpu.memref_slice %arg2[%274, %c0_i32_422] : memref<100x64xf32, #tpu.memory_space<any>> -> memref<1x64xf32, #tpu.memory_space<any>>
    %c14_i32_423 = arith.constant 14 : i32
    %c0_i32_424 = arith.constant 0 : i32
    %440 = tpu.memref_slice %arg5[%c1_i32_419, %c14_i32_423, %c0_i32_424] : memref<2x16x64xf32, #tpu.memory_space<vmem>> -> memref<1x1x64xf32, #tpu.memory_space<vmem>>
    %441 = tpu.memref_squeeze %440 : memref<1x1x64xf32, #tpu.memory_space<vmem>> -> memref<1x64xf32, #tpu.memory_space<vmem>>
    %442 = tpu.memref_slice %arg6[%c1_i32_420, %c14_i32_421] : memref<2x16x!tpu.dma_semaphore, #tpu.memory_space<semaphore_mem>> -> memref<1x1x!tpu.dma_semaphore, #tpu.memory_space<semaphore_mem>>
    %443 = tpu.memref_squeeze %442 : memref<1x1x!tpu.dma_semaphore, #tpu.memory_space<semaphore_mem>> -> memref<!tpu.dma_semaphore, #tpu.memory_space<semaphore_mem>>
    tpu.wait_dma2 semaphore(%443 : memref<!tpu.dma_semaphore, #tpu.memory_space<semaphore_mem>>) src(%439 : memref<1x64xf32, #tpu.memory_space<any>>) dst(%441 : memref<1x64xf32, #tpu.memory_space<vmem>>)
    %c1_i32_425 = arith.constant 1 : i32
    %c1_i32_426 = arith.constant 1 : i32
    %c15_i32_427 = arith.constant 15 : i32
    %c0_i32_428 = arith.constant 0 : i32
    %444 = tpu.memref_slice %arg2[%283, %c0_i32_428] : memref<100x64xf32, #tpu.memory_space<any>> -> memref<1x64xf32, #tpu.memory_space<any>>
    %c15_i32_429 = arith.constant 15 : i32
    %c0_i32_430 = arith.constant 0 : i32
    %445 = tpu.memref_slice %arg5[%c1_i32_425, %c15_i32_429, %c0_i32_430] : memref<2x16x64xf32, #tpu.memory_space<vmem>> -> memref<1x1x64xf32, #tpu.memory_space<vmem>>
    %446 = tpu.memref_squeeze %445 : memref<1x1x64xf32, #tpu.memory_space<vmem>> -> memref<1x64xf32, #tpu.memory_space<vmem>>
    %447 = tpu.memref_slice %arg6[%c1_i32_426, %c15_i32_427] : memref<2x16x!tpu.dma_semaphore, #tpu.memory_space<semaphore_mem>> -> memref<1x1x!tpu.dma_semaphore, #tpu.memory_space<semaphore_mem>>
    %448 = tpu.memref_squeeze %447 : memref<1x1x!tpu.dma_semaphore, #tpu.memory_space<semaphore_mem>> -> memref<!tpu.dma_semaphore, #tpu.memory_space<semaphore_mem>>
    tpu.wait_dma2 semaphore(%448 : memref<!tpu.dma_semaphore, #tpu.memory_space<semaphore_mem>>) src(%444 : memref<1x64xf32, #tpu.memory_space<any>>) dst(%446 : memref<1x64xf32, #tpu.memory_space<vmem>>)
    %c0 = arith.constant 0 : index
    %c0_431 = arith.constant 0 : index
    %c0_432 = arith.constant 0 : index
    %449 = vector.load %arg5[%c0, %c0_431, %c0_432] : memref<2x16x64xf32, #tpu.memory_space<vmem>>, vector<2x16x64xf32>
    %c0_433 = arith.constant 0 : index
    %c0_434 = arith.constant 0 : index
    %450 = vector.load %arg3[%c0_433, %c0_434] : memref<16x64xf32, #tpu.memory_space<vmem>>, vector<16x64xf32>
    %451 = vector.shape_cast %450 : vector<16x64xf32> to vector<1x16x64xf32>
    %452 = vector.broadcast %451 : vector<1x16x64xf32> to vector<2x16x64xf32>
    %453 = arith.addf %449, %452 : vector<2x16x64xf32>
    %c0_435 = arith.constant 0 : index
    %c0_436 = arith.constant 0 : index
    %c0_437 = arith.constant 0 : index
    %454 = vector.load %arg4[%c0_435, %c0_436, %c0_437] : memref<2x16x64xf32, #tpu.memory_space<vmem>>, vector<2x16x64xf32>
    tpu.vector_store %arg4[%c0_435, %c0_436, %c0_437], %453 {strides = array<i32>} : memref<2x16x64xf32, #tpu.memory_space<vmem>>, vector<2x16x64xf32>,
    return
  }
  func.func @transform_1(%arg0: i32, %arg1: memref<64xi32, #tpu.memory_space<smem>>) -> (i32, i32) {
    %c0_i32 = arith.constant 0 : i32
    %c0_i32_0 = arith.constant 0 : i32
    %c0_i32_1 = arith.constant 0 : i32
    return %c0_i32, %c0_i32_0 : i32, i32
  }
  func.func @transform_2(%arg0: i32, %arg1: memref<64xi32, #tpu.memory_space<smem>>) -> (i32, i32, i32) {
    %c0_i32 = arith.constant 0 : i32
    %c0_i32_0 = arith.constant 0 : i32
    %c0_i32_1 = arith.constant 0 : i32
    return %arg0, %c0_i32, %c0_i32_0 : i32, i32, i32
  }
}

module attributes {stable_mosaic.version = 11 : i64} {
  func.func @_posadd_kernel(%arg0: i32, %arg1: memref<2x16x64xf32, #tpu.memory_space<vmem>>, %arg2: memref<16x64xf32, #tpu.memory_space<vmem>>, %arg3: memref<2x16x64xf32, #tpu.memory_space<vmem>>) attributes {dimension_semantics = [#tpu.dimension_semantics<parallel>], iteration_bounds = array<i64: 2>, scalar_prefetch = 0 : i64, scratch_operands = 0 : i64, tpu.core_type = #tpu.core_type<tc>, window_params = [{transform_indices = @transform_0, window_bounds = array<i64: 2, 16, 64>}, {pipeline_mode = #tpu.pipeline_mode<synchronous>, transform_indices = @transform_1, window_bounds = array<i64: 16, 64>}, {transform_indices = @transform_2, window_bounds = array<i64: 2, 16, 64>}]} {
    %c0 = arith.constant 0 : index
    %c0_0 = arith.constant 0 : index
    %c0_1 = arith.constant 0 : index
    %0 = vector.load %arg1[%c0, %c0_0, %c0_1] : memref<2x16x64xf32, #tpu.memory_space<vmem>>, vector<2x16x64xf32>
    %c0_2 = arith.constant 0 : index
    %c0_3 = arith.constant 0 : index
    %1 = vector.load %arg2[%c0_2, %c0_3] : memref<16x64xf32, #tpu.memory_space<vmem>>, vector<16x64xf32>
    %2 = vector.shape_cast %1 : vector<16x64xf32> to vector<1x16x64xf32>
    %3 = vector.broadcast %2 : vector<1x16x64xf32> to vector<2x16x64xf32>
    %4 = arith.addf %0, %3 : vector<2x16x64xf32>
    %c0_4 = arith.constant 0 : index
    %c0_5 = arith.constant 0 : index
    %c0_6 = arith.constant 0 : index
    %5 = vector.load %arg3[%c0_4, %c0_5, %c0_6] : memref<2x16x64xf32, #tpu.memory_space<vmem>>, vector<2x16x64xf32>
    tpu.vector_store %arg3[%c0_4, %c0_5, %c0_6], %4 {strides = array<i32>} : memref<2x16x64xf32, #tpu.memory_space<vmem>>, vector<2x16x64xf32>,
    return
  }
  func.func @transform_0(%arg0: i32) -> (i32, i32, i32) {
    %c0_i32 = arith.constant 0 : i32
    %c0_i32_0 = arith.constant 0 : i32
    %c0_i32_1 = arith.constant 0 : i32
    return %arg0, %c0_i32, %c0_i32_0 : i32, i32, i32
  }
  func.func @transform_1(%arg0: i32) -> (i32, i32) {
    %c0_i32 = arith.constant 0 : i32
    %c0_i32_0 = arith.constant 0 : i32
    %c0_i32_1 = arith.constant 0 : i32
    return %c0_i32, %c0_i32_0 : i32, i32
  }
  func.func @transform_2(%arg0: i32) -> (i32, i32, i32) {
    %c0_i32 = arith.constant 0 : i32
    %c0_i32_0 = arith.constant 0 : i32
    %c0_i32_1 = arith.constant 0 : i32
    return %arg0, %c0_i32, %c0_i32_0 : i32, i32, i32
  }
}

</mosaic_0001>

<bundles_post_ra>
// kernel: tpu_custom_call.1
= control target key start
LH: loop header
LB: loop body
LE: loop exit
PB: predicated region body
PF: predicated region fallthrough
CT: control target
= control target key end

     0   :  { %7 = vsyncpa [#allocation3], 0  ;;  %s735_s0 = inlined_call_operand.hbm [shape: f32[4,16,64], index: 0, kind: input, shape index: {}]   ;;  %s736_s1 = inlined_call_operand.hbm [shape: f32[16,64], index: 1, kind: input, shape index: {}]   ;;  %s737_s2 = inlined_call_operand.hbm [shape: f32[4,16,64], index: 2, kind: output, shape index: {}]  }
   0x1   :  { %9 = vsyncpa [#allocation3 + $0x1], 0 }
   0x2   :  { %10 = vsyncpa [#allocation6], 0 }
   0x3   :  { %11 = vsyncpa [#allocation4], 0 }
   0x4   :  { %13 = vsyncpa [#allocation4 + $0x1], 0  ;;  %s528_s9 = smov 0   ;;  %s530_s10 = smov 0  }
   0x5   :  { %s532_s11 = smov 0   ;;  %s534_s12 = smov 0  }
   0x6 LB: > { %s549_s13 = sadd.s32 4294967295, %s504_s12   ;;  %s293_s14 = sadd.s32 4294967294, %s504_s12   ;;  %s504_s12 = sphi %s534_s12, %s757_s12   ;;  %s500_s11 = sphi %s532_s11, %s756_s11   ;;  %s496_s10 = sphi %s530_s10, %s755_s10   ;;  %s492_s9 = sphi %s528_s9, %s754_s9  }
   0x7   : > { %p39_p0 = scmp.ne.s32.totalorder %s496_s10, %s492_s9  ;;  %p738_p1 = scmp.eq.s32.totalorder %s549_s13, 0 }
   0x8   : > { %p90_p3 = scmp.eq.s32.totalorder %s293_s14, 1  ;;  %p294_p5 = scmp.ge.s32.totalorder %s504_s12, 1 }
   0x9   : > { %p558_p4 = por %p738_p1, %p39_p0  ;;  %p97_p7 = scmp.lt.s32.totalorder %s504_s12, 3 }
   0xa   : > { %p563_p6 = por %p90_p3, %p39_p0  ;;  %s506_s18 = smov [#allocation5]  }
   0xb   : > { %s741_s15 = scalar_select %p558_p4, 1, 0 }
   0xc   : > { %s742_s16 = scalar_select %p563_p6, 1, 0 }
   0xd   : > { %p568_p8 = pnand %p294_p5, %p97_p7  ;;  %s109_s19 = sshll.u32 %s506_s18, 4  ;;  %s572_s19 = int_to_ptr.vmem [resolvable:$true] %s109_s19 }
   0xe   : > { %s584_s21 = sadd.s32 1, %s504_s12   ;;  %s26_s22 = sadd.s32 1, %s500_s11 }
   0xf   : > { %s743_s17 = scalar_select %p568_p8, 1, 0 }
  0x10   : > { %p323_p9 = pneg %p568_p8  ;;  %s23_s23 = ssub.s32 %s504_s12, %s584_s21 }
  0x11   : > { %s376_s26 = scalar_lea.hbm %s736_s1, 256 }
  0x12   : > { %p579_p11 = pnand %p323_p9, %p738_p1  ;;  %p377_p12 = scmp.ne.s32.totalorder %s736_s1, %s376_s26 }
  0x13   : > { %p383_p5 = scmp.lt.u32.totalorder %s376_s26, %s736_s1 }
  0x14   : > { %p378_p13 = pneg %p579_p11 }
  0x16   : > { %p379_p0 = pnand %p378_p13, %p377_p12 }
  0x18   : > { %p380_p3 = pneg %p379_p0 }
  0x1a   : > { %p385_p7 = pnand %p383_p5, %p380_p3 }
  0x1c   : > { %388 = shalt.err (!%p385_p7)
}
  0x1d   : > { %s389_s3 = scalar_lea.vmem %s572_s19, 256  ;;  %p397_p2 = scmp.lt.s32.totalorder %s572_s19, %s572_s19 }
  0x1e   : > { %p390_p9 = scmp.ne.s32.totalorder %s572_s19, %s389_s3  ;;  %p398_p6 = scmp.lt.s32.totalorder %s389_s3, %s389_s3 }
  0x20   : > { %p392_p10 = pnand %p390_p9, %p378_p13  ;;  %p399_p4 = por %p398_p6, %p397_p2 }
  0x22   : > { %p393_p1 = pneg %p392_p10 }
  0x24   : > { %p400_p8 = pnand %p399_p4, %p393_p1 }
  0x26   : > { %403 = shalt.err (!%p400_p8)
}
  0x27   : > { %s507_s4 = smov 128   ;;  %s508_s5 = smov 8  }
  0x28   : > { %326 = dma.hbm_to_vmem [thread:$0]  (!%p579_p11), %s736_s1, 256, %s572_s19, [#allocation6], %s507_s4, %s507_s4, %s508_s5  }
  0x29   : > { %p24_p1 = scmp.eq.s32.totalorder %s23_s23, 0  ;;  %p33_p2 = scmp.ne.s32.totalorder %s500_s11, %s496_s10 }
  0x2a   : > { %p34_p4 = scmp.eq.s32.totalorder %s504_s12, 0  ;;  %p336_p6 = scmp.lt.s32.totalorder %s504_s12, 2 }
  0x2b   : > { %s618_s8 = scalar_select %p24_p1, %s500_s11, %s26_s22  }
  0x2c   : > { %p35_p8 = por %p34_p4, %p33_p2  ;;  %p745_p10 = scmp.eq.s32.totalorder %s549_s13, 1 }
  0x2d   : > { %s123_s18 = sand.u32 1, %s500_s11   ;;  %s312_s20 = sshll.u32 %s504_s12, 9 }
  0x2e   : > { %p622_p12 = por %p745_p10, %p33_p2  ;;  %s297_s24 = sshll.u32 %s123_s18, 5 }
  0x2f   : > { %s631_s27 = scalar_lea.hbm %s735_s0, %s312_s20  ;;  %s127_s19 = scalar_lea.vmem [#allocation2], %s297_s24 }
  0x30   : > { %s135_s22 = sshll.u32 %s127_s19, 4  ;;  %p633_p11 = pnand %p336_p6, %p35_p8  ;;  %s637_s22 = int_to_ptr.vmem [resolvable:$true] %s135_s22 }
  0x31   : > { %s639_s28 = scalar_lea.sflag [#allocation3], %s123_s18  ;;  %s404_s29 = scalar_lea.hbm %s631_s27, 512 }
  0x32   : > { %p405_p13 = scmp.ne.s32.totalorder %s631_s27, %s404_s29  ;;  %p406_p0 = pneg %p633_p11 }
  0x33   : > { %s409_s6 = scalar_lea.hbm %s735_s0, 1024  ;;  %p410_p7 = scmp.lt.u32.totalorder %s631_s27, %s735_s0 }
  0x34   : > { %p407_p3 = pnand %p406_p0, %p405_p13  ;;  %p411_p9 = scmp.lt.u32.totalorder %s409_s6, %s404_s29 }
  0x35   : > { %p413_p2 = scmp.lt.u32.totalorder %s404_s29, %s631_s27 }
  0x36   : > { %p408_p5 = pneg %p407_p3  ;;  %p412_p1 = por %p411_p9, %p410_p7 }
  0x38   : > { %p414_p4 = por %p413_p2, %p412_p1 }
  0x3a   : > { %p415_p6 = pnand %p414_p4, %p408_p5 }
  0x3c   : > { %418 = shalt.err (!%p415_p6)
}
  0x3d   : > { %s419_s18 = scalar_lea.vmem %s637_s22, 512  ;;  %s509_s24 = smov [#allocation2]  }
  0x3e   : > { %p420_p8 = scmp.ne.s32.totalorder %s637_s22, %s419_s18  ;;  %s424_s25 = sshll.u32 %s509_s24, 4  ;;  %s425_s25 = int_to_ptr.vmem [resolvable:$false] %s424_s25 }
  0x3f   : > { %s426_s26 = scalar_lea.vmem %s425_s25, 1024  ;;  %p427_p3 = scmp.lt.s32.totalorder %s637_s22, %s425_s25 }
  0x40   : > { %p422_p10 = pnand %p420_p8, %p406_p0  ;;  %p428_p7 = scmp.lt.s32.totalorder %s426_s26, %s419_s18 }
  0x42   : > { %p423_p13 = pneg %p422_p10  ;;  %p429_p9 = por %p428_p7, %p427_p3 }
  0x44   : > { %p430_p1 = pnand %p429_p9, %p423_p13 }
  0x46   : > { %433 = shalt.err (!%p430_p1)
}
  0x47   : > { %330 = dma.hbm_to_vmem [thread:$0]  (!%p633_p11), %s631_s27, 512, %s637_s22, %s639_s28, %s507_s4, %s507_s4, %s508_s5  }
  0x48   : > { %p748_p0 = scmp.ne.s32.totalorder %s743_s17, 0 }
  0x49   : > { %s673_s19 = sand.u32 (!%p748_p0), 1, %s496_s10   ;;  %p749_p5 = scmp.ne.s32.totalorder (!%p748_p0), %s741_s15, 0 }
  0x4a   : > { %147 = sbr.rel (%p748_p0) target bundleno = 111 (0x6f), region = 28  ;;  %s302_s29 = sshll.u32 (!%p748_p0), %s673_s19, 5 }
  0x4b   : > { %s150_s30 = scalar_lea.sflag (!%p748_p0), [#allocation3], %s673_s19  ;;  %s153_s3 = scalar_lea.vmem (!%p748_p0), [#allocation2], %s302_s29 }
  0x51   : > { %479 = dma.done.wait (%p749_p5), %s150_s30, 512  }
  0x52   : > { %481 = vsyncadd (%p749_p5), %s150_s30, 4294966784  ;;  %p750_p2 = scmp.eq.s32.totalorder %s549_s13, 0 }
  0x54   : > { %483 = dma.done.wait (%p750_p2), [#allocation6], 256   ;;  %p751_p11 = pmov %p750_p2 }
  0x55   : > { %s177_s17 = scalar_lea.vmem [#allocation7], %s302_s29  ;;  %s314_s5 = sshll.u32 %s549_s13, 9  ;;  %v180_v0 = vld [vmem:[%s153_s3] sm:$0xff]  ;;  %vm190_vm0 = vcmask 523264   ;;  %v181_v2 = vld [vmem:[%s153_s3 + $0x8] sm:$0xff]  ;;  %v182_v5 = vld [vmem:[%s153_s3 + $0x10] sm:$0xff] }
  0x56   : > { %485 = vsyncadd (%p751_p11), [#allocation6], 4294967040  ;;  %s210_s4 = sshll.u32 %s177_s17, 4  ;;  %v184_v1 = vld [vmem:[#allocation5] sm:$0xff]  ;;  %v185_v4 = vld [vmem:[#allocation5 + $0x8] sm:$0xff]  ;;  %s691_s22 = scalar_lea.hbm %s737_s2, %s314_s5  ;;  %s686_s4 = int_to_ptr.vmem [resolvable:$true] %s210_s4 }
  0x57   : > { %v186_v3 = vadd.f32 %v184_v1, %v180_v0  ;;  %v183_v6 = vld [vmem:[%s153_s3 + $0x18] sm:$0xff]  ;;  %v187_v7 = vadd.f32 %v185_v4, %v181_v2  ;;  %v188_v8 = vadd.f32 %v184_v1, %v182_v5  ;;  %s196_s13 = scalar_lea.sflag [#allocation4], %s673_s19  ;;  %s434_s23 = scalar_lea.vmem %s686_s4, 512 }
  0x58   : > { %v189_v9 = vadd.f32 %v185_v4, %v183_v6  ;;  %p435_p4 = scmp.ne.s32.totalorder %s686_s4, %s434_s23  ;;  %s510_s28 = smov [#allocation7]  }
  0x59   : > { %191 = vst.msk [vmem:[%s177_s17] sm:$0xff] %vm190_vm0, %v186_v3  ;;  %192 = vst.msk [vmem:[%s177_s17 + $0x8] sm:$0xff] %vm190_vm0, %v187_v7  ;;  %s438_s6 = sshll.u32 %s510_s28, 4  ;;  %s439_s6 = int_to_ptr.vmem [resolvable:$false] %s438_s6 }
  0x5a   : > { %193 = vst.msk [vmem:[%s177_s17 + $0x10] sm:$0xff] %vm190_vm0, %v188_v8  ;;  %194 = vst.msk [vmem:[%s177_s17 + $0x18] sm:$0xff] %vm190_vm0, %v189_v9  ;;  %p436_p6 = pnand %p435_p4, %p622_p12  ;;  %s440_s7 = scalar_lea.vmem %s439_s6, 1024 }
  0x5b   : > { %p441_p10 = scmp.lt.s32.totalorder %s686_s4, %s439_s6  ;;  %p442_p13 = scmp.lt.s32.totalorder %s440_s7, %s434_s23 }
  0x5c   : > { %p437_p8 = pneg %p436_p6 }
  0x5d   : > { %p443_p3 = por %p442_p13, %p441_p10 }
  0x5f   : > { %p444_p7 = pnand %p443_p3, %p437_p8 }
  0x61   : > { %447 = shalt.err (!%p444_p7)
}
  0x62   : > { %s448_s20 = scalar_lea.hbm %s691_s22, 512  ;;  %s452_s25 = scalar_lea.hbm %s737_s2, 1024 }
  0x63   : > { %p449_p9 = scmp.ne.s32.totalorder %s691_s22, %s448_s20  ;;  %p453_p5 = scmp.lt.u32.totalorder %s691_s22, %s737_s2 }
  0x64   : > { %p454_p2 = scmp.lt.u32.totalorder %s452_s25, %s448_s20  ;;  %p456_p4 = scmp.lt.u32.totalorder %s448_s20, %s691_s22 }
  0x65   : > { %p450_p1 = pnand %p449_p9, %p622_p12 }
  0x66   : > { %p455_p11 = por %p454_p2, %p453_p5 }
  0x67   : > { %p451_p0 = pneg %p450_p1 }
  0x68   : > { %p457_p6 = por %p456_p4, %p455_p11 }
  0x6a   : > { %p458_p8 = pnand %p457_p6, %p451_p0 }
  0x6c   : > { %461 = shalt.err (!%p458_p8)
}
  0x6d   : > { %s511_s30 = smov 128   ;;  %s512_s3 = smov 8  }
  0x6e   : > { %321 = dma.vmem_to_hbm [thread:$0]  (%p622_p12), %s686_s4, 512, %s691_s22, %s196_s13, %s511_s30, %s511_s30, %s512_s3  }
  0x6f PF: > { %s225_s17 = sand.u32 1, %s492_s9   ;;  %p752_p10 = scmp.ne.s32.totalorder %s742_s16, 0 }
  0x70   : > { %p753_p13 = scmp.ge.s32.totalorder %s504_s12, 2  ;;  %s226_s5 = scalar_lea.sflag [#allocation4], %s225_s17 }
  0x72   : > { %p332_p3 = pnand %p753_p13, %p752_p10 }
  0x74   : > { %487 = dma.done.wait (!%p332_p3), %s226_s5, 512  }
  0x75   : > { %489 = vsyncadd (!%p332_p3), %s226_s5, 4294966784  ;;  %p16_p7 = scmp.ge.s32.totalorder %s584_s21, 4   ;;  %s754_s9 = smov %s496_s10 }
  0x76   : > { %s755_s10 = smov %s500_s11  ;;  %s756_s11 = smov %s618_s8 }
  0x77   : > { %s757_s12 = smov %s584_s21  ;;  %18 = sbr.rel (!%p16_p7) target bundleno = 6 (0x6), region = 77 }
  0x7e   :  { %231 = vsyncpa [#allocation3], 1 }
  0x7f   :  { %233 = vsyncpa [#allocation3 + $0x1], 1 }
  0x80   :  { %234 = vsyncpa [#allocation6], 1 }
  0x81   :  { %235 = vsyncpa [#allocation4], 1 }
  0x82   :  { %237 = vsyncpa [#allocation4 + $0x1], 1 }

</bundles_post_ra>
